<compile_context>
chip_gen: v5e
topology: v5e:2x2
jax: 0.10.0
libtpu: 0.0.40
codegen_flags: <defaults>
</compile_context>

<pallas_src>
import functools

import jax
import jax.numpy as jnp
from jax.experimental import pallas as pl
from jax.experimental.pallas import tpu as pltpu


# --------------------------------------------------------------------------
# Pallas kernel bodies
# --------------------------------------------------------------------------
def _apply_act(y, act, slope):
    if act == "leaky_relu":
        return jnp.where(y > 0, y, slope * y)
    if act == "sigmoid":
        return jax.nn.sigmoid(y)
    return y


def _conv_act_kernel(w_ref, cols_ref, o_ref, *, act, slope):
    """One-shot (Cout,K)@(K,m_tile) MXU dot + activation.  No accumulator."""
    y = jnp.dot(w_ref[...], cols_ref[...], preferred_element_type=jnp.float32)
    o_ref[...] = _apply_act(y, act, slope).astype(o_ref.dtype)


def _conv_bn_act_fused_kernel(w_ref, cols_ref, g_ref, b_ref, o_ref, *, eps, slope):
    """Conv + training-mode BatchNorm + LeakyReLU, full M resident (single block)."""
    y = jnp.dot(w_ref[...], cols_ref[...], preferred_element_type=jnp.float32)
    m = y.shape[1]
    mean = jnp.sum(y, axis=1, keepdims=True) / m
    d = y - mean
    var = jnp.sum(d * d, axis=1, keepdims=True) / m      # biased (torch training)
    y = d * jax.lax.rsqrt(var + eps) * g_ref[...] + b_ref[...]
    o_ref[...] = _apply_act(y, "leaky_relu", slope).astype(o_ref.dtype)


def _conv_stats_kernel(w_ref, cols_ref, raw_ref, ssum_ref, ssq_ref):
    """Two-pass BN, pass 1: conv tile + per-channel sum / sum-of-squares.

    ssum/ssq output blocks are resident across the M grid axis (constant
    index_map, axis marked "arbitrary") and act as accumulators.
    """
    y = jnp.dot(w_ref[...], cols_ref[...], preferred_element_type=jnp.float32)
    raw_ref[...] = y.astype(raw_ref.dtype)

    @pl.when(pl.program_id(0) == 0)
    def _init():
        ssum_ref[...] = jnp.zeros_like(ssum_ref)
        ssq_ref[...] = jnp.zeros_like(ssq_ref)

    ssum_ref[...] += jnp.sum(y, axis=1, keepdims=True)
    ssq_ref[...] += jnp.sum(y * y, axis=1, keepdims=True)


def _bn_act_kernel(raw_ref, ssum_ref, ssq_ref, g_ref, b_ref, o_ref,
                   *, count, eps, slope):
    """Two-pass BN, pass 2: normalize + LeakyReLU, tiled over M ("parallel")."""
    y = raw_ref[...].astype(jnp.float32)
    mean = ssum_ref[...] / count
    var = ssq_ref[...] / count - mean * mean
    y = (y - mean) * jax.lax.rsqrt(var + eps) * g_ref[...] + b_ref[...]
    o_ref[...] = _apply_act(y, "leaky_relu", slope).astype(o_ref.dtype)


# --------------------------------------------------------------------------
# pallas_call wrappers
# --------------------------------------------------------------------------
_VMEM_LIMIT = 32 * 1024 * 1024   # > every default scoped limit, < v7x physical


def _compiler_params(sem):
    return pltpu.CompilerParams(dimension_semantics=(sem,),
                                vmem_limit_bytes=_VMEM_LIMIT)


def _pick_m_tile(M, K, *, elem_bytes=2, cols_budget_bytes=4 * 1024 * 1024,
                 max_tile=8192):
    """Largest multiple-of-128 divisor of M with cols block <= ~4 MiB."""
    cap = min(max_tile, max(128, cols_budget_bytes // (K * elem_bytes)))
    if M <= cap:
        return M
    t = (cap // 128) * 128
    while t >= 128:
        if M % t == 0:
            return t
        t -= 128
    return M   # no multiple-of-128 divisor: fall back to one full block


def conv_layer_pallas(w_mat, cols, *, gamma=None, beta=None, act="leaky_relu",
                      out_dtype=jnp.bfloat16, eps=1e-5, slope=0.2):
    """out = act(BN?(w_mat @ cols)) on the MXU.

    w_mat: (Cout, K) bf16, cols: (K, M) bf16  ->  out: (Cout, M) out_dtype.
    """
    Cout, K = w_mat.shape
    K2, M = cols.shape
    assert K == K2
    bn = gamma is not None

    m_tile = _pick_m_tile(M, K)
    n_m = M // m_tile

    w_spec = pl.BlockSpec((Cout, K), lambda m: (0, 0))
    cols_spec = pl.BlockSpec((K, m_tile), lambda m: (0, m))
    out_spec = pl.BlockSpec((Cout, m_tile), lambda m: (0, m))

    if not bn:
        return pl.pallas_call(
            functools.partial(_conv_act_kernel, act=act, slope=slope),
            out_shape=jax.ShapeDtypeStruct((Cout, M), out_dtype),
            grid=(n_m,),
            in_specs=[w_spec, cols_spec],
            out_specs=out_spec,
            compiler_params=_compiler_params("parallel"),
        )(w_mat, cols)

    g = gamma.reshape(Cout, 1).astype(jnp.float32)
    b = beta.reshape(Cout, 1).astype(jnp.float32)
    gb_spec = pl.BlockSpec((Cout, 1), lambda m: (0, 0))

    if n_m == 1:
        # Whole M resident: fully fused conv + BN + LeakyReLU.
        return pl.pallas_call(
            functools.partial(_conv_bn_act_fused_kernel, eps=eps, slope=slope),
            out_shape=jax.ShapeDtypeStruct((Cout, M), out_dtype),
            grid=(1,),
            in_specs=[w_spec, cols_spec, gb_spec, gb_spec],
            out_specs=out_spec,
            compiler_params=_compiler_params("parallel"),
        )(w_mat, cols, g, b)

    # Large batch: two-pass BN with batch-independent VMEM footprint.
    stat_spec = pl.BlockSpec((Cout, 1), lambda m: (0, 0))
    raw_spec = pl.BlockSpec((Cout, m_tile), lambda m: (0, m))
    raw, ssum, ssq = pl.pallas_call(
        _conv_stats_kernel,
        out_shape=(jax.ShapeDtypeStruct((Cout, M), jnp.bfloat16),
                   jax.ShapeDtypeStruct((Cout, 1), jnp.float32),
                   jax.ShapeDtypeStruct((Cout, 1), jnp.float32)),
        grid=(n_m,),
        in_specs=[w_spec, cols_spec],
        out_specs=(raw_spec, stat_spec, stat_spec),
        compiler_params=_compiler_params("arbitrary"),
    )(w_mat, cols)

    return pl.pallas_call(
        functools.partial(_bn_act_kernel, count=float(M), eps=eps, slope=slope),
        out_shape=jax.ShapeDtypeStruct((Cout, M), out_dtype),
        grid=(n_m,),
        in_specs=[raw_spec, stat_spec, stat_spec, gb_spec, gb_spec],
        out_specs=out_spec,
        compiler_params=_compiler_params("parallel"),
    )(raw, ssum, ssq, g, b)


# --------------------------------------------------------------------------
# im2col in channel-major layout (pure data movement, XLA glue)
# --------------------------------------------------------------------------
def _im2col_cnhw(x, *, stride, pad, ksize=4):
    """x: (C, N, H, W) -> cols: (C*k*k, N*Hout*Wout), K row order (c, ky, kx)."""
    C, N, H, W = x.shape
    Hout = (H + 2 * pad - ksize) // stride + 1
    Wout = (W + 2 * pad - ksize) // stride + 1
    if pad:
        x = jnp.pad(x, ((0, 0), (0, 0), (pad, pad), (pad, pad)))
    if stride == 1 and pad == 0 and H == ksize and W == ksize:
        # kxk input with kxk kernel: pure reshape/transpose, no expansion.
        cols = jnp.transpose(x.reshape(C, N, ksize * ksize), (0, 2, 1))
        return cols.reshape(C * ksize * ksize, N), 1, 1
    taps = []
    for ky in range(ksize):
        for kx in range(ksize):
            taps.append(x[:, :,
                          ky: ky + stride * (Hout - 1) + 1: stride,
                          kx: kx + stride * (Wout - 1) + 1: stride])
    cols = jnp.stack(taps, axis=1)                    # (C, k*k, N, Hout, Wout)
    return cols.reshape(C * ksize * ksize, N * Hout * Wout), Hout, Wout


# --------------------------------------------------------------------------
# Parameters
# --------------------------------------------------------------------------
def init_params(key, ndf, nc):
    """f32 PyTorch-layout (OIHW) conv weights + BN affine params."""
    ks = jax.random.split(key, 5)

    def conv_w(k, cin, cout):
        lim = 1.0 / ((cin * 16) ** 0.5)
        return jax.random.uniform(k, (cout, cin, 4, 4), jnp.float32, -lim, lim)

    return {
        "w1": conv_w(ks[0], nc, ndf),
        "w2": conv_w(ks[1], ndf, ndf * 2),
        "w3": conv_w(ks[2], ndf * 2, ndf * 4),
        "w4": conv_w(ks[3], ndf * 4, ndf * 8),
        "w5": conv_w(ks[4], ndf * 8, 1),
        "g2": jnp.ones((ndf * 2,), jnp.float32),
        "b2": jnp.zeros((ndf * 2,), jnp.float32),
        "g3": jnp.ones((ndf * 4,), jnp.float32),
        "b3": jnp.zeros((ndf * 4,), jnp.float32),
        "g4": jnp.ones((ndf * 8,), jnp.float32),
        "b4": jnp.zeros((ndf * 8,), jnp.float32),
    }


def prepare_kernel_params(params):
    """One-time weight prep: OIHW f32 -> bf16 (Cout, Cin*16) matmul matrices.

    The final layer's single output channel is zero-padded to 8 rows once, so
    no per-call padding copies are needed anywhere.
    """
    out = dict(params)
    for name in ("w1", "w2", "w3", "w4"):
        w = params[name]
        out[name] = w.reshape(w.shape[0], -1).astype(jnp.bfloat16)
    w5 = params["w5"].reshape(1, -1)
    w5 = jnp.concatenate([w5, jnp.zeros((7, w5.shape[1]), w5.dtype)], axis=0)
    out["w5"] = w5.astype(jnp.bfloat16)
    return out


# --------------------------------------------------------------------------
# Forward pass
# --------------------------------------------------------------------------
def dcgan_discriminator64_forward(x_nchw, kparams):
    """x_nchw: (N, nc, 64, 64).  Returns (N,) sigmoid scores."""
    x = jnp.transpose(x_nchw, (1, 0, 2, 3)).astype(jnp.bfloat16)  # (C, N, H, W)

    def block(x, w, *, stride, pad, gamma=None, beta=None, act,
              out_dtype=jnp.bfloat16):
        _, n, _, _ = x.shape
        cols, Hout, Wout = _im2col_cnhw(x, stride=stride, pad=pad)
        y = conv_layer_pallas(w, cols, gamma=gamma, beta=beta, act=act,
                              out_dtype=out_dtype)
        return y.reshape(w.shape[0], n, Hout, Wout)

    x = block(x, kparams["w1"], stride=2, pad=1, act="leaky_relu")           # 32x32
    x = block(x, kparams["w2"], stride=2, pad=1, gamma=kparams["g2"],
              beta=kparams["b2"], act="leaky_relu")                          # 16x16
    x = block(x, kparams["w3"], stride=2, pad=1, gamma=kparams["g3"],
              beta=kparams["b3"], act="leaky_relu")                          # 8x8
    x = block(x, kparams["w4"], stride=2, pad=1, gamma=kparams["g4"],
              beta=kparams["b4"], act="leaky_relu")                          # 4x4
    x = block(x, kparams["w5"], stride=1, pad=0, act="sigmoid",
              out_dtype=jnp.float32)                                         # (8,N,1,1)
    return x[0].reshape(-1)   # real channel 0 only -> (N,), matches view/squeeze


# --------------------------------------------------------------------------
# Pure-JAX reference (for correctness check only)
# --------------------------------------------------------------------------
def _reference_forward(x_nchw, params, eps=1e-5, slope=0.2):
    def conv(x, w, stride, pad):
        return jax.lax.conv_general_dilated(
            x, w, window_strides=(stride, stride),
            padding=[(pad, pad), (pad, pad)],
            dimension_numbers=("NCHW", "OIHW", "NCHW"))

    def bn(x, g, b):
        mean = jnp.mean(x, axis=(0, 2, 3), keepdims=True)
        var = jnp.mean((x - mean) ** 2, axis=(0, 2, 3), keepdims=True)
        return ((x - mean) * jax.lax.rsqrt(var + eps) * g[None, :, None, None]
                + b[None, :, None, None])

    def lrelu(x):
        return jnp.where(x > 0, x, slope * x)

    rnd = lambda v: v.astype(jnp.bfloat16).astype(jnp.float32)  # mirror bf16 path
    q = lambda w: w.astype(jnp.bfloat16).astype(jnp.float32)
    x = rnd(x_nchw)
    x = rnd(lrelu(conv(x, q(params["w1"]), 2, 1)))
    x = rnd(lrelu(bn(conv(x, q(params["w2"]), 2, 1), params["g2"], params["b2"])))
    x = rnd(lrelu(bn(conv(x, q(params["w3"]), 2, 1), params["g3"], params["b3"])))
    x = rnd(lrelu(bn(conv(x, q(params["w4"]), 2, 1), params["g4"], params["b4"])))
    x = jax.nn.sigmoid(conv(x, q(params["w5"]), 1, 0))
    return x.reshape(-1)


if __name__ == "__main__":
    # opt: num_filters=8, dataset='mnist' -> nc=1; discriminator input is 64x64.
    ndf, nc = 8, 1
    key = jax.random.PRNGKey(0)
    kx, kp = jax.random.split(key)

    params = init_params(kp, ndf, nc)
    kparams = prepare_kernel_params(params)
    fwd = jax.jit(dcgan_discriminator64_forward)

    # batch=2 exercises the fully fused single-block paths; batch=40 exercises
    # the multi-tile "parallel" conv path and the two-pass (tiled-M) BatchNorm.
    for batch in (2, 40):
        x = jax.random.normal(jax.random.fold_in(kx, batch),
                              (batch, nc, 64, 64), jnp.float32)
        out = jax.block_until_ready(fwd(x, kparams))

        assert out.shape == (batch,), out.shape
        assert bool(jnp.all(jnp.isfinite(out)))
        assert bool(jnp.all((out >= 0.0) & (out <= 1.0)))   # sigmoid range

        ref = _reference_forward(x, params)
        assert bool(jnp.max(jnp.abs(out - ref)) < 5e-2), (batch, out, ref)

    print("KERNEL_OK")
</pallas_src>

<mosaic_0001>
module attributes {stable_mosaic.version = 11 : i64} {
  func.func @_conv_act_kernel(%arg0: i32, %arg1: memref<8x16xbf16, #tpu.memory_space<vmem>>, %arg2: memref<16x2048xbf16, #tpu.memory_space<vmem>>, %arg3: memref<8x2048xbf16, #tpu.memory_space<vmem>>) attributes {dimension_semantics = [#tpu.dimension_semantics<parallel>], iteration_bounds = array<i64: 1>, scalar_prefetch = 0 : i64, scratch_operands = 0 : i64, tpu.core_type = #tpu.core_type<tc>, window_params = [{pipeline_mode = #tpu.pipeline_mode<synchronous>, transform_indices = @transform_0, window_bounds = array<i64: 8, 16>}, {transform_indices = @transform_1, window_bounds = array<i64: 16, 2048>}, {transform_indices = @transform_2, window_bounds = array<i64: 8, 2048>}]} {
    %c0 = arith.constant 0 : index
    %c0_0 = arith.constant 0 : index
    %0 = vector.load %arg1[%c0, %c0_0] : memref<8x16xbf16, #tpu.memory_space<vmem>>, vector<8x16xbf16>
    %c0_1 = arith.constant 0 : index
    %c0_2 = arith.constant 0 : index
    %1 = vector.load %arg2[%c0_1, %c0_2] : memref<16x2048xbf16, #tpu.memory_space<vmem>>, vector<16x2048xbf16>
    %cst = arith.constant dense<0.000000e+00> : vector<8x2048xf32>
    %2 = tpu.matmul %0, %1, %cst {dimension_numbers = #tpu.dot_dimension_numbers<[1], [0], [0], [1], [0, 0, 1, 1], [], []>} : vector<8x16xbf16>, vector<16x2048xbf16>, vector<8x2048xf32> -> vector<8x2048xf32>
    %cst_3 = arith.constant 0.000000e+00 : f32
    %3 = vector.broadcast %cst_3 : f32 to vector<8x2048xf32>
    %4 = arith.cmpf ogt, %2, %3 : vector<8x2048xf32>
    %cst_4 = arith.constant 2.000000e-01 : f32
    %5 = vector.broadcast %cst_4 : f32 to vector<8x2048xf32>
    %6 = arith.mulf %5, %2 : vector<8x2048xf32>
    %7 = arith.select %4, %2, %6 : vector<8x2048xi1>, vector<8x2048xf32>
    %8 = arith.truncf %7 : vector<8x2048xf32> to vector<8x2048xbf16>
    %c0_5 = arith.constant 0 : index
    %c0_6 = arith.constant 0 : index
    %9 = vector.load %arg3[%c0_5, %c0_6] : memref<8x2048xbf16, #tpu.memory_space<vmem>>, vector<8x2048xbf16>
    tpu.vector_store %arg3[%c0_5, %c0_6], %8 {strides = array<i32>} : memref<8x2048xbf16, #tpu.memory_space<vmem>>, vector<8x2048xbf16>,
    return
  }
  func.func @transform_0(%arg0: i32) -> (i32, i32) {
    %c0_i32 = arith.constant 0 : i32
    %c0_i32_0 = arith.constant 0 : i32
    %c0_i32_1 = arith.constant 0 : i32
    return %c0_i32, %c0_i32_0 : i32, i32
  }
  func.func @transform_1(%arg0: i32) -> (i32, i32) {
    %c0_i32 = arith.constant 0 : i32
    %c0_i32_0 = arith.constant 0 : i32
    return %c0_i32, %arg0 : i32, i32
  }
  func.func @transform_2(%arg0: i32) -> (i32, i32) {
    %c0_i32 = arith.constant 0 : i32
    %c0_i32_0 = arith.constant 0 : i32
    return %c0_i32, %arg0 : i32, i32
  }
}

module attributes {stable_mosaic.version = 11 : i64} {
  func.func @_conv_bn_act_fused_kernel(%arg0: i32, %arg1: memref<16x128xbf16, #tpu.memory_space<vmem>>, %arg2: memref<128x512xbf16, #tpu.memory_space<vmem>>, %arg3: memref<16x1xf32, #tpu.memory_space<vmem>>, %arg4: memref<16x1xf32, #tpu.memory_space<vmem>>, %arg5: memref<16x512xbf16, #tpu.memory_space<vmem>>) attributes {dimension_semantics = [#tpu.dimension_semantics<parallel>], iteration_bounds = array<i64: 1>, scalar_prefetch = 0 : i64, scratch_operands = 0 : i64, tpu.core_type = #tpu.core_type<tc>, window_params = [{pipeline_mode = #tpu.pipeline_mode<synchronous>, transform_indices = @transform_0, window_bounds = array<i64: 16, 128>}, {transform_indices = @transform_1, window_bounds = array<i64: 128, 512>}, {pipeline_mode = #tpu.pipeline_mode<synchronous>, transform_indices = @transform_2, window_bounds = array<i64: 16, 1>}, {pipeline_mode = #tpu.pipeline_mode<synchronous>, transform_indices = @transform_3, window_bounds = array<i64: 16, 1>}, {transform_indices = @transform_4, window_bounds = array<i64: 16, 512>}]} {
    %c0 = arith.constant 0 : index
    %c0_0 = arith.constant 0 : index
    %0 = vector.load %arg1[%c0, %c0_0] : memref<16x128xbf16, #tpu.memory_space<vmem>>, vector<16x128xbf16>
    %c0_1 = arith.constant 0 : index
    %c0_2 = arith.constant 0 : index
    %1 = vector.load %arg2[%c0_1, %c0_2] : memref<128x512xbf16, #tpu.memory_space<vmem>>, vector<128x512xbf16>
    %cst = arith.constant dense<0.000000e+00> : vector<16x512xf32>
    %2 = tpu.matmul %0, %1, %cst {dimension_numbers = #tpu.dot_dimension_numbers<[1], [0], [0], [1], [0, 0, 1, 1], [], []>} : vector<16x128xbf16>, vector<128x512xbf16>, vector<16x512xf32> -> vector<16x512xf32>
    %cst_3 = arith.constant dense<0.000000e+00> : vector<16xf32>
    %3 = vector.multi_reduction <add>, %2, %cst_3 [1] : vector<16x512xf32> to vector<16xf32>
    %4 = vector.shape_cast %3 : vector<16xf32> to vector<16x1xf32>
    %cst_4 = arith.constant 5.120000e+02 : f32
    %5 = vector.broadcast %cst_4 : f32 to vector<16x1xf32>
    %6 = arith.divf %4, %5 : vector<16x1xf32>
    %7 = vector.broadcast %6 : vector<16x1xf32> to vector<16x512xf32>
    %8 = arith.subf %2, %7 : vector<16x512xf32>
    %9 = arith.mulf %8, %8 : vector<16x512xf32>
    %cst_5 = arith.constant dense<0.000000e+00> : vector<16xf32>
    %10 = vector.multi_reduction <add>, %9, %cst_5 [1] : vector<16x512xf32> to vector<16xf32>
    %11 = vector.shape_cast %10 : vector<16xf32> to vector<16x1xf32>
    %cst_6 = arith.constant 5.120000e+02 : f32
    %12 = vector.broadcast %cst_6 : f32 to vector<16x1xf32>
    %13 = arith.divf %11, %12 : vector<16x1xf32>
    %cst_7 = arith.constant 9.99999974E-6 : f32
    %14 = vector.broadcast %cst_7 : f32 to vector<16x1xf32>
    %15 = arith.addf %13, %14 : vector<16x1xf32>
    %16 = math.rsqrt %15 : vector<16x1xf32>
    %17 = vector.broadcast %16 : vector<16x1xf32> to vector<16x512xf32>
    %18 = arith.mulf %8, %17 : vector<16x512xf32>
    %c0_8 = arith.constant 0 : index
    %c0_9 = arith.constant 0 : index
    %19 = vector.load %arg3[%c0_8, %c0_9] : memref<16x1xf32, #tpu.memory_space<vmem>>, vector<16x1xf32>
    %20 = vector.broadcast %19 : vector<16x1xf32> to vector<16x512xf32>
    %21 = arith.mulf %18, %20 : vector<16x512xf32>
    %c0_10 = arith.constant 0 : index
    %c0_11 = arith.constant 0 : index
    %22 = vector.load %arg4[%c0_10, %c0_11] : memref<16x1xf32, #tpu.memory_space<vmem>>, vector<16x1xf32>
    %23 = vector.broadcast %22 : vector<16x1xf32> to vector<16x512xf32>
    %24 = arith.addf %21, %23 : vector<16x512xf32>
    %cst_12 = arith.constant 0.000000e+00 : f32
    %25 = vector.broadcast %cst_12 : f32 to vector<16x512xf32>
    %26 = arith.cmpf ogt, %24, %25 : vector<16x512xf32>
    %cst_13 = arith.constant 2.000000e-01 : f32
    %27 = vector.broadcast %cst_13 : f32 to vector<16x512xf32>
    %28 = arith.mulf %27, %24 : vector<16x512xf32>
    %29 = arith.select %26, %24, %28 : vector<16x512xi1>, vector<16x512xf32>
    %30 = arith.truncf %29 : vector<16x512xf32> to vector<16x512xbf16>
    %c0_14 = arith.constant 0 : index
    %c0_15 = arith.constant 0 : index
    %31 = vector.load %arg5[%c0_14, %c0_15] : memref<16x512xbf16, #tpu.memory_space<vmem>>, vector<16x512xbf16>
    tpu.vector_store %arg5[%c0_14, %c0_15], %30 {strides = array<i32>} : memref<16x512xbf16, #tpu.memory_space<vmem>>, vector<16x512xbf16>,
    return
  }
  func.func @transform_0(%arg0: i32) -> (i32, i32) {
    %c0_i32 = arith.constant 0 : i32
    %c0_i32_0 = arith.constant 0 : i32
    %c0_i32_1 = arith.constant 0 : i32
    return %c0_i32, %c0_i32_0 : i32, i32
  }
  func.func @transform_1(%arg0: i32) -> (i32, i32) {
    %c0_i32 = arith.constant 0 : i32
    %c0_i32_0 = arith.constant 0 : i32
    return %c0_i32, %arg0 : i32, i32
  }
  func.func @transform_2(%arg0: i32) -> (i32, i32) {
    %c0_i32 = arith.constant 0 : i32
    %c0_i32_0 = arith.constant 0 : i32
    %c0_i32_1 = arith.constant 0 : i32
    return %c0_i32, %c0_i32_0 : i32, i32
  }
  func.func @transform_3(%arg0: i32) -> (i32, i32) {
    %c0_i32 = arith.constant 0 : i32
    %c0_i32_0 = arith.constant 0 : i32
    %c0_i32_1 = arith.constant 0 : i32
    return %c0_i32, %c0_i32_0 : i32, i32
  }
  func.func @transform_4(%arg0: i32) -> (i32, i32) {
    %c0_i32 = arith.constant 0 : i32
    %c0_i32_0 = arith.constant 0 : i32
    return %c0_i32, %arg0 : i32, i32
  }
}

module attributes {stable_mosaic.version = 11 : i64} {
  func.func @_conv_bn_act_fused_kernel(%arg0: i32, %arg1: memref<32x256xbf16, #tpu.memory_space<vmem>>, %arg2: memref<256x128xbf16, #tpu.memory_space<vmem>>, %arg3: memref<32x1xf32, #tpu.memory_space<vmem>>, %arg4: memref<32x1xf32, #tpu.memory_space<vmem>>, %arg5: memref<32x128xbf16, #tpu.memory_space<vmem>>) attributes {dimension_semantics = [#tpu.dimension_semantics<parallel>], iteration_bounds = array<i64: 1>, scalar_prefetch = 0 : i64, scratch_operands = 0 : i64, tpu.core_type = #tpu.core_type<tc>, window_params = [{pipeline_mode = #tpu.pipeline_mode<synchronous>, transform_indices = @transform_0, window_bounds = array<i64: 32, 256>}, {transform_indices = @transform_1, window_bounds = array<i64: 256, 128>}, {pipeline_mode = #tpu.pipeline_mode<synchronous>, transform_indices = @transform_2, window_bounds = array<i64: 32, 1>}, {pipeline_mode = #tpu.pipeline_mode<synchronous>, transform_indices = @transform_3, window_bounds = array<i64: 32, 1>}, {transform_indices = @transform_4, window_bounds = array<i64: 32, 128>}]} {
    %c0 = arith.constant 0 : index
    %c0_0 = arith.constant 0 : index
    %0 = vector.load %arg1[%c0, %c0_0] : memref<32x256xbf16, #tpu.memory_space<vmem>>, vector<32x256xbf16>
    %c0_1 = arith.constant 0 : index
    %c0_2 = arith.constant 0 : index
    %1 = vector.load %arg2[%c0_1, %c0_2] : memref<256x128xbf16, #tpu.memory_space<vmem>>, vector<256x128xbf16>
    %cst = arith.constant dense<0.000000e+00> : vector<32x128xf32>
    %2 = tpu.matmul %0, %1, %cst {dimension_numbers = #tpu.dot_dimension_numbers<[1], [0], [0], [1], [0, 0, 1, 1], [], []>} : vector<32x256xbf16>, vector<256x128xbf16>, vector<32x128xf32> -> vector<32x128xf32>
    %cst_3 = arith.constant dense<0.000000e+00> : vector<32xf32>
    %3 = vector.multi_reduction <add>, %2, %cst_3 [1] : vector<32x128xf32> to vector<32xf32>
    %4 = vector.shape_cast %3 : vector<32xf32> to vector<32x1xf32>
    %cst_4 = arith.constant 1.280000e+02 : f32
    %5 = vector.broadcast %cst_4 : f32 to vector<32x1xf32>
    %6 = arith.divf %4, %5 : vector<32x1xf32>
    %7 = vector.broadcast %6 : vector<32x1xf32> to vector<32x128xf32>
    %8 = arith.subf %2, %7 : vector<32x128xf32>
    %9 = arith.mulf %8, %8 : vector<32x128xf32>
    %cst_5 = arith.constant dense<0.000000e+00> : vector<32xf32>
    %10 = vector.multi_reduction <add>, %9, %cst_5 [1] : vector<32x128xf32> to vector<32xf32>
    %11 = vector.shape_cast %10 : vector<32xf32> to vector<32x1xf32>
    %cst_6 = arith.constant 1.280000e+02 : f32
    %12 = vector.broadcast %cst_6 : f32 to vector<32x1xf32>
    %13 = arith.divf %11, %12 : vector<32x1xf32>
    %cst_7 = arith.constant 9.99999974E-6 : f32
    %14 = vector.broadcast %cst_7 : f32 to vector<32x1xf32>
    %15 = arith.addf %13, %14 : vector<32x1xf32>
    %16 = math.rsqrt %15 : vector<32x1xf32>
    %17 = vector.broadcast %16 : vector<32x1xf32> to vector<32x128xf32>
    %18 = arith.mulf %8, %17 : vector<32x128xf32>
    %c0_8 = arith.constant 0 : index
    %c0_9 = arith.constant 0 : index
    %19 = vector.load %arg3[%c0_8, %c0_9] : memref<32x1xf32, #tpu.memory_space<vmem>>, vector<32x1xf32>
    %20 = vector.broadcast %19 : vector<32x1xf32> to vector<32x128xf32>
    %21 = arith.mulf %18, %20 : vector<32x128xf32>
    %c0_10 = arith.constant 0 : index
    %c0_11 = arith.constant 0 : index
    %22 = vector.load %arg4[%c0_10, %c0_11] : memref<32x1xf32, #tpu.memory_space<vmem>>, vector<32x1xf32>
    %23 = vector.broadcast %22 : vector<32x1xf32> to vector<32x128xf32>
    %24 = arith.addf %21, %23 : vector<32x128xf32>
    %cst_12 = arith.constant 0.000000e+00 : f32
    %25 = vector.broadcast %cst_12 : f32 to vector<32x128xf32>
    %26 = arith.cmpf ogt, %24, %25 : vector<32x128xf32>
    %cst_13 = arith.constant 2.000000e-01 : f32
    %27 = vector.broadcast %cst_13 : f32 to vector<32x128xf32>
    %28 = arith.mulf %27, %24 : vector<32x128xf32>
    %29 = arith.select %26, %24, %28 : vector<32x128xi1>, vector<32x128xf32>
    %30 = arith.truncf %29 : vector<32x128xf32> to vector<32x128xbf16>
    %c0_14 = arith.constant 0 : index
    %c0_15 = arith.constant 0 : index
    %31 = vector.load %arg5[%c0_14, %c0_15] : memref<32x128xbf16, #tpu.memory_space<vmem>>, vector<32x128xbf16>
    tpu.vector_store %arg5[%c0_14, %c0_15], %30 {strides = array<i32>} : memref<32x128xbf16, #tpu.memory_space<vmem>>, vector<32x128xbf16>,
    return
  }
  func.func @transform_0(%arg0: i32) -> (i32, i32) {
    %c0_i32 = arith.constant 0 : i32
    %c0_i32_0 = arith.constant 0 : i32
    %c0_i32_1 = arith.constant 0 : i32
    return %c0_i32, %c0_i32_0 : i32, i32
  }
  func.func @transform_1(%arg0: i32) -> (i32, i32) {
    %c0_i32 = arith.constant 0 : i32
    %c0_i32_0 = arith.constant 0 : i32
    return %c0_i32, %arg0 : i32, i32
  }
  func.func @transform_2(%arg0: i32) -> (i32, i32) {
    %c0_i32 = arith.constant 0 : i32
    %c0_i32_0 = arith.constant 0 : i32
    %c0_i32_1 = arith.constant 0 : i32
    return %c0_i32, %c0_i32_0 : i32, i32
  }
  func.func @transform_3(%arg0: i32) -> (i32, i32) {
    %c0_i32 = arith.constant 0 : i32
    %c0_i32_0 = arith.constant 0 : i32
    %c0_i32_1 = arith.constant 0 : i32
    return %c0_i32, %c0_i32_0 : i32, i32
  }
  func.func @transform_4(%arg0: i32) -> (i32, i32) {
    %c0_i32 = arith.constant 0 : i32
    %c0_i32_0 = arith.constant 0 : i32
    return %c0_i32, %arg0 : i32, i32
  }
}

module attributes {stable_mosaic.version = 11 : i64} {
  func.func @_conv_bn_act_fused_kernel(%arg0: i32, %arg1: memref<64x512xbf16, #tpu.memory_space<vmem>>, %arg2: memref<512x32xbf16, #tpu.memory_space<vmem>>, %arg3: memref<64x1xf32, #tpu.memory_space<vmem>>, %arg4: memref<64x1xf32, #tpu.memory_space<vmem>>, %arg5: memref<64x32xbf16, #tpu.memory_space<vmem>>) attributes {dimension_semantics = [#tpu.dimension_semantics<parallel>], iteration_bounds = array<i64: 1>, scalar_prefetch = 0 : i64, scratch_operands = 0 : i64, tpu.core_type = #tpu.core_type<tc>, window_params = [{pipeline_mode = #tpu.pipeline_mode<synchronous>, transform_indices = @transform_0, window_bounds = array<i64: 64, 512>}, {transform_indices = @transform_1, window_bounds = array<i64: 512, 32>}, {pipeline_mode = #tpu.pipeline_mode<synchronous>, transform_indices = @transform_2, window_bounds = array<i64: 64, 1>}, {pipeline_mode = #tpu.pipeline_mode<synchronous>, transform_indices = @transform_3, window_bounds = array<i64: 64, 1>}, {transform_indices = @transform_4, window_bounds = array<i64: 64, 32>}]} {
    %c0 = arith.constant 0 : index
    %c0_0 = arith.constant 0 : index
    %0 = vector.load %arg1[%c0, %c0_0] : memref<64x512xbf16, #tpu.memory_space<vmem>>, vector<64x512xbf16>
    %c0_1 = arith.constant 0 : index
    %c0_2 = arith.constant 0 : index
    %1 = vector.load %arg2[%c0_1, %c0_2] : memref<512x32xbf16, #tpu.memory_space<vmem>>, vector<512x32xbf16>
    %cst = arith.constant dense<0.000000e+00> : vector<64x32xf32>
    %2 = tpu.matmul %0, %1, %cst {dimension_numbers = #tpu.dot_dimension_numbers<[1], [0], [0], [1], [0, 0, 1, 1], [], []>} : vector<64x512xbf16>, vector<512x32xbf16>, vector<64x32xf32> -> vector<64x32xf32>
    %cst_3 = arith.constant dense<0.000000e+00> : vector<64xf32>
    %3 = vector.multi_reduction <add>, %2, %cst_3 [1] : vector<64x32xf32> to vector<64xf32>
    %4 = vector.shape_cast %3 : vector<64xf32> to vector<64x1xf32>
    %cst_4 = arith.constant 3.200000e+01 : f32
    %5 = vector.broadcast %cst_4 : f32 to vector<64x1xf32>
    %6 = arith.divf %4, %5 : vector<64x1xf32>
    %7 = vector.broadcast %6 : vector<64x1xf32> to vector<64x32xf32>
    %8 = arith.subf %2, %7 : vector<64x32xf32>
    %9 = arith.mulf %8, %8 : vector<64x32xf32>
    %cst_5 = arith.constant dense<0.000000e+00> : vector<64xf32>
    %10 = vector.multi_reduction <add>, %9, %cst_5 [1] : vector<64x32xf32> to vector<64xf32>
    %11 = vector.shape_cast %10 : vector<64xf32> to vector<64x1xf32>
    %cst_6 = arith.constant 3.200000e+01 : f32
    %12 = vector.broadcast %cst_6 : f32 to vector<64x1xf32>
    %13 = arith.divf %11, %12 : vector<64x1xf32>
    %cst_7 = arith.constant 9.99999974E-6 : f32
    %14 = vector.broadcast %cst_7 : f32 to vector<64x1xf32>
    %15 = arith.addf %13, %14 : vector<64x1xf32>
    %16 = math.rsqrt %15 : vector<64x1xf32>
    %17 = vector.broadcast %16 : vector<64x1xf32> to vector<64x32xf32>
    %18 = arith.mulf %8, %17 : vector<64x32xf32>
    %c0_8 = arith.constant 0 : index
    %c0_9 = arith.constant 0 : index
    %19 = vector.load %arg3[%c0_8, %c0_9] : memref<64x1xf32, #tpu.memory_space<vmem>>, vector<64x1xf32>
    %20 = vector.broadcast %19 : vector<64x1xf32> to vector<64x32xf32>
    %21 = arith.mulf %18, %20 : vector<64x32xf32>
    %c0_10 = arith.constant 0 : index
    %c0_11 = arith.constant 0 : index
    %22 = vector.load %arg4[%c0_10, %c0_11] : memref<64x1xf32, #tpu.memory_space<vmem>>, vector<64x1xf32>
    %23 = vector.broadcast %22 : vector<64x1xf32> to vector<64x32xf32>
    %24 = arith.addf %21, %23 : vector<64x32xf32>
    %cst_12 = arith.constant 0.000000e+00 : f32
    %25 = vector.broadcast %cst_12 : f32 to vector<64x32xf32>
    %26 = arith.cmpf ogt, %24, %25 : vector<64x32xf32>
    %cst_13 = arith.constant 2.000000e-01 : f32
    %27 = vector.broadcast %cst_13 : f32 to vector<64x32xf32>
    %28 = arith.mulf %27, %24 : vector<64x32xf32>
    %29 = arith.select %26, %24, %28 : vector<64x32xi1>, vector<64x32xf32>
    %30 = arith.truncf %29 : vector<64x32xf32> to vector<64x32xbf16>
    %c0_14 = arith.constant 0 : index
    %c0_15 = arith.constant 0 : index
    %31 = vector.load %arg5[%c0_14, %c0_15] : memref<64x32xbf16, #tpu.memory_space<vmem>>, vector<64x32xbf16>
    tpu.vector_store %arg5[%c0_14, %c0_15], %30 {strides = array<i32>} : memref<64x32xbf16, #tpu.memory_space<vmem>>, vector<64x32xbf16>,
    return
  }
  func.func @transform_0(%arg0: i32) -> (i32, i32) {
    %c0_i32 = arith.constant 0 : i32
    %c0_i32_0 = arith.constant 0 : i32
    %c0_i32_1 = arith.constant 0 : i32
    return %c0_i32, %c0_i32_0 : i32, i32
  }
  func.func @transform_1(%arg0: i32) -> (i32, i32) {
    %c0_i32 = arith.constant 0 : i32
    %c0_i32_0 = arith.constant 0 : i32
    return %c0_i32, %arg0 : i32, i32
  }
  func.func @transform_2(%arg0: i32) -> (i32, i32) {
    %c0_i32 = arith.constant 0 : i32
    %c0_i32_0 = arith.constant 0 : i32
    %c0_i32_1 = arith.constant 0 : i32
    return %c0_i32, %c0_i32_0 : i32, i32
  }
  func.func @transform_3(%arg0: i32) -> (i32, i32) {
    %c0_i32 = arith.constant 0 : i32
    %c0_i32_0 = arith.constant 0 : i32
    %c0_i32_1 = arith.constant 0 : i32
    return %c0_i32, %c0_i32_0 : i32, i32
  }
  func.func @transform_4(%arg0: i32) -> (i32, i32) {
    %c0_i32 = arith.constant 0 : i32
    %c0_i32_0 = arith.constant 0 : i32
    return %c0_i32, %arg0 : i32, i32
  }
}

module attributes {stable_mosaic.version = 11 : i64} {
  func.func @_conv_act_kernel(%arg0: i32, %arg1: memref<8x1024xbf16, #tpu.memory_space<vmem>>, %arg2: memref<1024x2xbf16, #tpu.memory_space<vmem>>, %arg3: memref<8x2xf32, #tpu.memory_space<vmem>>) attributes {dimension_semantics = [#tpu.dimension_semantics<parallel>], iteration_bounds = array<i64: 1>, scalar_prefetch = 0 : i64, scratch_operands = 0 : i64, tpu.core_type = #tpu.core_type<tc>, window_params = [{pipeline_mode = #tpu.pipeline_mode<synchronous>, transform_indices = @transform_0, window_bounds = array<i64: 8, 1024>}, {transform_indices = @transform_1, window_bounds = array<i64: 1024, 2>}, {transform_indices = @transform_2, window_bounds = array<i64: 8, 2>}]} {
    %c0 = arith.constant 0 : index
    %c0_0 = arith.constant 0 : index
    %0 = vector.load %arg1[%c0, %c0_0] : memref<8x1024xbf16, #tpu.memory_space<vmem>>, vector<8x1024xbf16>
    %c0_1 = arith.constant 0 : index
    %c0_2 = arith.constant 0 : index
    %1 = vector.load %arg2[%c0_1, %c0_2] : memref<1024x2xbf16, #tpu.memory_space<vmem>>, vector<1024x2xbf16>
    %cst = arith.constant dense<0.000000e+00> : vector<8x2xf32>
    %2 = tpu.matmul %0, %1, %cst {dimension_numbers = #tpu.dot_dimension_numbers<[1], [0], [0], [1], [0, 0, 1, 1], [], []>} : vector<8x1024xbf16>, vector<1024x2xbf16>, vector<8x2xf32> -> vector<8x2xf32>
    %3 = arith.negf %2 : vector<8x2xf32>
    %4 = math.exp %3 : vector<8x2xf32>
    %cst_3 = arith.constant 1.000000e+00 : f32
    %5 = vector.broadcast %cst_3 : f32 to vector<8x2xf32>
    %6 = arith.addf %5, %4 : vector<8x2xf32>
    %7 = arith.divf %5, %6 : vector<8x2xf32>
    %c0_4 = arith.constant 0 : index
    %c0_5 = arith.constant 0 : index
    %8 = vector.load %arg3[%c0_4, %c0_5] : memref<8x2xf32, #tpu.memory_space<vmem>>, vector<8x2xf32>
    tpu.vector_store %arg3[%c0_4, %c0_5], %7 {strides = array<i32>} : memref<8x2xf32, #tpu.memory_space<vmem>>, vector<8x2xf32>,
    return
  }
  func.func @transform_0(%arg0: i32) -> (i32, i32) {
    %c0_i32 = arith.constant 0 : i32
    %c0_i32_0 = arith.constant 0 : i32
    %c0_i32_1 = arith.constant 0 : i32
    return %c0_i32, %c0_i32_0 : i32, i32
  }
  func.func @transform_1(%arg0: i32) -> (i32, i32) {
    %c0_i32 = arith.constant 0 : i32
    %c0_i32_0 = arith.constant 0 : i32
    return %c0_i32, %arg0 : i32, i32
  }
  func.func @transform_2(%arg0: i32) -> (i32, i32) {
    %c0_i32 = arith.constant 0 : i32
    %c0_i32_0 = arith.constant 0 : i32
    return %c0_i32, %arg0 : i32, i32
  }
}

</mosaic_0001>

<bundles_post_ra>
// kernel: dcgan_discriminator64_forward.5
= control target key start
LH: loop header
LB: loop body
LE: loop exit
PB: predicated region body
PF: predicated region fallthrough
CT: control target
= control target key end

     0   :  { %vm109_vm0 = vcmask 130048   ;;  %s657_s1 = inlined_call_operand.vmem [shape: bf16[16,2048], index: 1, kind: input, shape index: {}]   ;;  %s658_s0 = inlined_call_operand.vmem [shape: bf16[8,16], index: 0, kind: input, shape index: {}]   ;;  %s659_s2 = inlined_call_operand.vmem [shape: bf16[8,2048], index: 2, kind: output, shape index: {}]  }
   0x1   :  { %v391_v0 = vld [vmem:[%s657_s1] sm:$0xf]  ;;  %v469_v2 = vld [vmem:[%s657_s1 + $0x4] sm:$0xf]  ;;  %v399_v5 = vld [vmem:[%s657_s1 + $0x8] sm:$0xf] }
   0x2   :  { %v477_v1 = vld [vmem:[%s657_s1 + $0x3c] sm:$0xf0]  ;;  %v393_v4 = vld [vmem:[%s657_s1 + $0x40] sm:$0xf0]  ;;  %v478_v6 = vld [vmem:[%s657_s1 + $0x44] sm:$0xf0] }
   0x3   :  { %v392_v3 = vor.u32 %v477_v1, %v391_v0  ;;  %v396_v7 = vor.u32 %v469_v2, %v393_v4  ;;  %v400_v8 = vor.u32 %v478_v6, %v399_v5  ;;  %v470_v9 = vld [vmem:[%s657_s1 + $0xc] sm:$0xf]  ;;  %v527_v11 = vld [vmem:[%s658_s0] sm:$0xf]  ;;  %v415_v13 = vld [vmem:[%s657_s1 + $0x18] sm:$0xf] }
   0x4   :  { %v401_v10 = vld [vmem:[%s657_s1 + $0x48] sm:$0xf0]  ;;  %v480_v14 = vld [vmem:[%s657_s1 + $0x54] sm:$0xf0]  ;;  %v472_v15 = vld [vmem:[%s657_s1 + $0x1c] sm:$0xf] }
   0x5   :  { %120 = vmatpush.bf16.msra.mxu0 %v392_v3  ;;  %v404_v12 = vor.u32 %v470_v9, %v401_v10  ;;  %133 = vmatpush.bf16.msra.mxu1 %v396_v7  ;;  %v416_v16 = vor.u32 %v480_v14, %v415_v13  ;;  %v417_v17 = vld [vmem:[%s657_s1 + $0x58] sm:$0xf0]  ;;  %v407_v18 = vld [vmem:[%s657_s1 + $0x10] sm:$0xf]  ;;  %v471_v22 = vld [vmem:[%s657_s1 + $0x14] sm:$0xf] }
   0x6   :  { %146 = vmatpush.bf16.msra.mxu2 %v400_v8  ;;  %v479_v19 = vld [vmem:[%s657_s1 + $0x4c] sm:$0xf0]  ;;  %v420_v20 = vor.u32 %v472_v15, %v417_v17  ;;  %v409_v23 = vld [vmem:[%s657_s1 + $0x50] sm:$0xf0]  ;;  %v431_v24 = vld [vmem:[%s657_s1 + $0x28] sm:$0xf] }
   0x7   :  { %159 = vmatpush.bf16.msra.mxu3 %v404_v12  ;;  %v408_v21 = vor.u32 %v479_v19, %v407_v18  ;;  %v412_v25 = vor.u32 %v471_v22, %v409_v23  ;;  %v482_v26 = vld [vmem:[%s657_s1 + $0x64] sm:$0xf0]  ;;  %v474_v27 = vld [vmem:[%s657_s1 + $0x2c] sm:$0xf]  ;;  %v423_v31 = vld [vmem:[%s657_s1 + $0x20] sm:$0xf] }
   0x8   :  { %453 = vmatmul.msk.bf16.vlgmr.msra.gmra.mxu0 %vm109_vm0, %v527_v11  ;;  %v433_v28 = vld [vmem:[%s657_s1 + $0x68] sm:$0xf0]  ;;  %454 = vmatmul.msk.bf16.vlgmr.msra.gmra.mxu1 %vm109_vm0, %v527_v11  ;;  %v432_v29 = vor.u32 %v482_v26, %v431_v24  ;;  %v481_v32 = vld [vmem:[%s657_s1 + $0x5c] sm:$0xf0]  ;;  %v473_v33 = vld [vmem:[%s657_s1 + $0x24] sm:$0xf] }
   0x9   :  { %455 = vmatmul.msk.bf16.vlgmr.msra.gmra.mxu2 %vm109_vm0, %v527_v11  ;;  %v436_v30 = vor.u32 %v474_v27, %v433_v28  ;;  %172 = vmatpush.bf16.msrb.mxu0 %v408_v21  ;;  %v424_v34 = vor.u32 %v481_v32, %v423_v31  ;;  %v425_v35 = vld [vmem:[%s657_s1 + $0x60] sm:$0xf0]  ;;  %v447_v37 = vld [vmem:[%s657_s1 + $0x38] sm:$0xf]  ;;  %v476_v39 = vld [vmem:[%s657_s1 + $0x3c] sm:$0xf] }
   0xa   :  { %198 = vmatpush.bf16.msrb.mxu2 %v416_v16  ;;  %456 = vmatmul.msk.bf16.vlgmr.msra.gmra.mxu3 %vm109_vm0, %v527_v11  ;;  %v428_v36 = vor.u32 %v473_v33, %v425_v35  ;;  %v484_v38 = vld [vmem:[%s657_s1 + $0x74] sm:$0xf0]  ;;  %v449_v40 = vld [vmem:[%s657_s1 + $0x78] sm:$0xf0]  ;;  %v439_v41 = vld [vmem:[%s657_s1 + $0x30] sm:$0xf] }
   0xb   :  { %211 = vmatpush.bf16.msrb.mxu3 %v420_v20  ;;  %185 = vmatpush.bf16.msrb.mxu1 %v412_v25  ;;  %v483_v42 = vld [vmem:[%s657_s1 + $0x6c] sm:$0xf0]  ;;  %v475_v43 = vld [vmem:[%s657_s1 + $0x34] sm:$0xf]  ;;  %v448_v45 = vor.u32 %v484_v38, %v447_v37  ;;  %v452_v46 = vor.u32 %v476_v39, %v449_v40 }
   0xc   :  { %v441_v44 = vld [vmem:[%s657_s1 + $0x70] sm:$0xf0]  ;;  %v440_v47 = vor.u32 %v483_v42, %v439_v41 }
   0xd   :  { %224 = vmatpush.bf16.msra.mxu0 %v424_v34  ;;  %v444_v48 = vor.u32 %v475_v43, %v441_v44 }
   0xe   :  { %250 = vmatpush.bf16.msra.mxu2 %v432_v29 }
   0xf   :  { %263 = vmatpush.bf16.msra.mxu3 %v436_v30  ;;  %237 = vmatpush.bf16.msra.mxu1 %v428_v36 }
  0x18   :  { %457 = vmatmul.msk.bf16.vlgmr.msrb.gmra.mxu0 %vm109_vm0, %v527_v11  ;;  %458 = vmatmul.msk.bf16.vlgmr.msrb.gmra.mxu1 %vm109_vm0, %v527_v11 }
  0x19   :  { %459 = vmatmul.msk.bf16.vlgmr.msrb.gmra.mxu2 %vm109_vm0, %v527_v11  ;;  %276 = vmatpush.bf16.msrb.mxu0 %v440_v47 }
  0x1a   :  { %460 = vmatmul.msk.bf16.vlgmr.msrb.gmra.mxu3 %vm109_vm0, %v527_v11  ;;  %302 = vmatpush.bf16.msrb.mxu2 %v448_v45 }
  0x1b   :  { %315 = vmatpush.bf16.msrb.mxu3 %v452_v46  ;;  %289 = vmatpush.bf16.msrb.mxu1 %v444_v48 }
  0x28   :  { %461 = vmatmul.msk.bf16.vlgmr.msra.gmra.mxu0 %vm109_vm0, %v527_v11  ;;  %462 = vmatmul.msk.bf16.vlgmr.msra.gmra.mxu1 %vm109_vm0, %v527_v11 }
  0x29   :  { %463 = vmatmul.msk.bf16.vlgmr.msra.gmra.mxu2 %vm109_vm0, %v527_v11 }
  0x2a   :  { %464 = vmatmul.msk.bf16.vlgmr.msra.gmra.mxu3 %vm109_vm0, %v527_v11 }
  0x38   :  { %465 = vmatmul.msk.bf16.vlgmr.msrb.gmra.mxu0 %vm109_vm0, %v527_v11  ;;  %466 = vmatmul.msk.bf16.vlgmr.msrb.gmra.mxu1 %vm109_vm0, %v527_v11 }
  0x39   :  { %467 = vmatmul.msk.bf16.vlgmr.msrb.gmra.mxu2 %vm109_vm0, %v527_v11 }
  0x3a   :  { %468 = vmatmul.msk.bf16.vlgmr.msrb.gmra.mxu3 %vm109_vm0, %v527_v11 }
  0x85   :  { %v122_v49 = vpop.f32.mrf.mxu0  ;;  %v135_v51 = vpop.f32.mrf.mxu1 }
  0x86   :  { %vm321_vm1 = vcmp.gt.f32.partialorder %v122_v49, 0.0  ;;  %v337_v50 = vmul.f32 0.2, %v122_v49  ;;  %vm322_vm2 = vcmp.gt.f32.partialorder %v135_v51, 0.0  ;;  %v338_v52 = vmul.f32 0.2, %v135_v51 }
  0x88   :  { %v353_v53 = vsel %vm321_vm1, %v122_v49, %v337_v50  ;;  %v354_v54 = vsel %vm322_vm2, %v135_v51, %v338_v52 }
  0x89   :  { %v369_v55 = vpack.c.bf16 %v354_v54, %v353_v53 }
  0x8b   :  { %377 = vst [vmem:[%s659_s2] sm:$0xff] %v369_v55 }
  0x8c   :  { %v148_v56 = vpop.f32.mrf.mxu2 }
  0x8d   :  { %vm323_vm3 = vcmp.gt.f32.partialorder %v148_v56, 0.0  ;;  %v339_v57 = vmul.f32 0.2, %v148_v56  ;;  %v161_v58 = vpop.f32.mrf.mxu3  ;;  %v124_v59 = vpop.f32.mrf.mxu0 }
  0x8e   :  { %vm324_vm4 = vcmp.gt.f32.partialorder %v161_v58, 0.0  ;;  %v340_v60 = vmul.f32 0.2, %v161_v58  ;;  %v137_v61 = vpop.f32.mrf.mxu1 }
  0x8f   :  { %v355_v62 = vsel %vm323_vm3, %v148_v56, %v339_v57 }
  0x90   :  { %v356_v63 = vsel %vm324_vm4, %v161_v58, %v340_v60 }
  0x91   :  { %v370_v0 = vpack.c.bf16 %v356_v63, %v355_v62 }
  0x93   :  { %378 = vst [vmem:[%s659_s2 + $0x8] sm:$0xff] %v370_v0 }
  0x94   :  { %v150_v1 = vpop.f32.mrf.mxu2 }
  0x95   :  { %v163_v2 = vpop.f32.mrf.mxu3  ;;  %v174_v3 = vpop.f32.mrf.mxu0 }
  0x96   :  { %vm325_vm5 = vcmp.gt.f32.partialorder %v174_v3, 0.0  ;;  %v341_v4 = vmul.f32 0.2, %v174_v3  ;;  %v187_v5 = vpop.f32.mrf.mxu1 }
  0x97   :  { %vm326_vm6 = vcmp.gt.f32.partialorder %v187_v5, 0.0  ;;  %v342_v6 = vmul.f32 0.2, %v187_v5 }
  0x98   :  { %v357_v7 = vsel %vm325_vm5, %v174_v3, %v341_v4 }
  0x99   :  { %v358_v8 = vsel %vm326_vm6, %v187_v5, %v342_v6 }
  0x9a   :  { %v371_v9 = vpack.c.bf16 %v358_v8, %v357_v7 }
  0x9c   :  { %379 = vst [vmem:[%s659_s2 + $0x10] sm:$0xff] %v371_v9  ;;  %v200_v10 = vpop.f32.mrf.mxu2 }
  0x9d   :  { %vm327_vm7 = vcmp.gt.f32.partialorder %v200_v10, 0.0  ;;  %v343_v11 = vmul.f32 0.2, %v200_v10  ;;  %v213_v12 = vpop.f32.mrf.mxu3  ;;  %v176_v13 = vpop.f32.mrf.mxu0 }
  0x9e   :  { %vm328_vm8 = vcmp.gt.f32.partialorder %v213_v12, 0.0  ;;  %v344_v14 = vmul.f32 0.2, %v213_v12  ;;  %v189_v15 = vpop.f32.mrf.mxu1 }
  0x9f   :  { %v359_v16 = vsel %vm327_vm7, %v200_v10, %v343_v11 }
  0xa0   :  { %v360_v17 = vsel %vm328_vm8, %v213_v12, %v344_v14 }
  0xa1   :  { %v372_v18 = vpack.c.bf16 %v360_v17, %v359_v16 }
  0xa3   :  { %380 = vst [vmem:[%s659_s2 + $0x18] sm:$0xff] %v372_v18 }
  0xa4   :  { %v202_v19 = vpop.f32.mrf.mxu2 }
  0xa5   :  { %v215_v20 = vpop.f32.mrf.mxu3  ;;  %v226_v21 = vpop.f32.mrf.mxu0 }
  0xa6   :  { %vm329_vm9 = vcmp.gt.f32.partialorder %v226_v21, 0.0  ;;  %v345_v22 = vmul.f32 0.2, %v226_v21  ;;  %v239_v23 = vpop.f32.mrf.mxu1 }
  0xa7   :  { %vm330_vm10 = vcmp.gt.f32.partialorder %v239_v23, 0.0  ;;  %v346_v24 = vmul.f32 0.2, %v239_v23 }
  0xa8   :  { %v361_v25 = vsel %vm329_vm9, %v226_v21, %v345_v22 }
  0xa9   :  { %v362_v26 = vsel %vm330_vm10, %v239_v23, %v346_v24 }
  0xaa   :  { %v373_v27 = vpack.c.bf16 %v362_v26, %v361_v25 }
  0xac   :  { %381 = vst [vmem:[%s659_s2 + $0x20] sm:$0xff] %v373_v27  ;;  %v252_v28 = vpop.f32.mrf.mxu2 }
  0xad   :  { %vm331_vm11 = vcmp.gt.f32.partialorder %v252_v28, 0.0  ;;  %v347_v29 = vmul.f32 0.2, %v252_v28  ;;  %v265_v30 = vpop.f32.mrf.mxu3  ;;  %v228_v31 = vpop.f32.mrf.mxu0 }
  0xae   :  { %vm332_vm12 = vcmp.gt.f32.partialorder %v265_v30, 0.0  ;;  %v348_v32 = vmul.f32 0.2, %v265_v30  ;;  %v241_v33 = vpop.f32.mrf.mxu1 }
  0xaf   :  { %v363_v34 = vsel %vm331_vm11, %v252_v28, %v347_v29 }
  0xb0   :  { %v364_v35 = vsel %vm332_vm12, %v265_v30, %v348_v32 }
  0xb1   :  { %v374_v36 = vpack.c.bf16 %v364_v35, %v363_v34 }
  0xb3   :  { %382 = vst [vmem:[%s659_s2 + $0x28] sm:$0xff] %v374_v36 }
  0xb4   :  { %v254_v37 = vpop.f32.mrf.mxu2 }
  0xb5   :  { %v267_v38 = vpop.f32.mrf.mxu3  ;;  %v278_v39 = vpop.f32.mrf.mxu0 }
  0xb6   :  { %vm333_vm13 = vcmp.gt.f32.partialorder %v278_v39, 0.0  ;;  %v349_v40 = vmul.f32 0.2, %v278_v39  ;;  %v291_v41 = vpop.f32.mrf.mxu1 }
  0xb7   :  { %vm334_vm14 = vcmp.gt.f32.partialorder %v291_v41, 0.0  ;;  %v350_v42 = vmul.f32 0.2, %v291_v41 }
  0xb8   :  { %v365_v43 = vsel %vm333_vm13, %v278_v39, %v349_v40 }
  0xb9   :  { %v366_v44 = vsel %vm334_vm14, %v291_v41, %v350_v42 }
  0xba   :  { %v375_v45 = vpack.c.bf16 %v366_v44, %v365_v43 }
  0xbc   :  { %383 = vst [vmem:[%s659_s2 + $0x30] sm:$0xff] %v375_v45  ;;  %v304_v46 = vpop.f32.mrf.mxu2 }
  0xbd   :  { %vm335_vm15 = vcmp.gt.f32.partialorder %v304_v46, 0.0  ;;  %v351_v47 = vmul.f32 0.2, %v304_v46  ;;  %v317_v48 = vpop.f32.mrf.mxu3  ;;  %v280_v49 = vpop.f32.mrf.mxu0 }
  0xbe   :  { %vm336_vm0 = vcmp.gt.f32.partialorder %v317_v48, 0.0  ;;  %v352_v50 = vmul.f32 0.2, %v317_v48  ;;  %v293_v51 = vpop.f32.mrf.mxu1 }
  0xbf   :  { %v367_v52 = vsel %vm335_vm15, %v304_v46, %v351_v47 }
  0xc0   :  { %v368_v53 = vsel %vm336_vm0, %v317_v48, %v352_v50 }
  0xc1   :  { %v376_v54 = vpack.c.bf16 %v368_v53, %v367_v52 }
  0xc3   :  { %384 = vst [vmem:[%s659_s2 + $0x38] sm:$0xff] %v376_v54 }
  0xc4   :  { %v306_v55 = vpop.f32.mrf.mxu2 }
  0xc5   :  { %v319_v56 = vpop.f32.mrf.mxu3 }

// kernel: dcgan_discriminator64_forward.6
= control target key start
LH: loop header
LB: loop body
LE: loop exit
PB: predicated region body
PF: predicated region fallthrough
CT: control target
= control target key end

     0   :  { %s869_s1 = inlined_call_operand.vmem [shape: bf16[128,512], index: 1, kind: input, shape index: {}]   ;;  %s870_s0 = inlined_call_operand.vmem [shape: bf16[16,128], index: 0, kind: input, shape index: {}]   ;;  %s871_s3 = inlined_call_operand.vmem [shape: f32[16,1], index: 3, kind: input, shape index: {}]   ;;  %s872_s2 = inlined_call_operand.vmem [shape: f32[16,1], index: 2, kind: input, shape index: {}]   ;;  %s873_s4 = inlined_call_operand.vmem [shape: bf16[16,512], index: 4, kind: output, shape index: {}]  }
   0x1   :  { %v544_v0 = vld [vmem:[%s869_s1 + $0xe0] sm:$0xf]  ;;  %v589_v1 = vld [vmem:[%s869_s1 + $0xec] sm:$0xf0]  ;;  %v587_v2 = vld [vmem:[%s869_s1 + $0xe4] sm:$0xf] }
   0x2   :  { %v545_v3 = vor.u32 %v589_v1, %v544_v0  ;;  %v546_v4 = vld [vmem:[%s869_s1 + $0xf0] sm:$0xf0]  ;;  %v552_v5 = vld [vmem:[%s869_s1 + $0xe8] sm:$0xf]  ;;  %v590_v6 = vld [vmem:[%s869_s1 + $0xf4] sm:$0xf0] }
   0x3   :  { %v549_v7 = vor.u32 %v587_v2, %v546_v4  ;;  %v553_v8 = vor.u32 %v590_v6, %v552_v5  ;;  %v588_v9 = vld [vmem:[%s869_s1 + $0xec] sm:$0xf]  ;;  %v554_v10 = vld [vmem:[%s869_s1 + $0xf8] sm:$0xf0]  ;;  %v528_v11 = vld [vmem:[%s869_s1 + $0xc0] sm:$0xf] }
   0x4   :  { %217 = vmatpush.bf16.msra.mxu0 %v545_v3  ;;  %v557_v12 = vor.u32 %v588_v9, %v554_v10  ;;  %v585_v13 = vld [vmem:[%s869_s1 + $0xcc] sm:$0xf0]  ;;  %v583_v14 = vld [vmem:[%s869_s1 + $0xc4] sm:$0xf]  ;;  %v530_v15 = vld [vmem:[%s869_s1 + $0xd0] sm:$0xf0] }
   0x5   :  { %231 = vmatpush.bf16.msra.mxu1 %v549_v7  ;;  %245 = vmatpush.bf16.msra.mxu2 %v553_v8  ;;  %v529_v16 = vor.u32 %v585_v13, %v528_v11  ;;  %v533_v17 = vor.u32 %v583_v14, %v530_v15  ;;  %v536_v18 = vld [vmem:[%s869_s1 + $0xc8] sm:$0xf]  ;;  %v586_v19 = vld [vmem:[%s869_s1 + $0xd4] sm:$0xf0]  ;;  %v584_v20 = vld [vmem:[%s869_s1 + $0xcc] sm:$0xf] }
   0x6   :  { %259 = vmatpush.bf16.msra.mxu3 %v557_v12  ;;  %v537_v21 = vor.u32 %v586_v19, %v536_v18  ;;  %v538_v22 = vld [vmem:[%s869_s1 + $0xd8] sm:$0xf0]  ;;  %v512_v23 = vld [vmem:[%s869_s1 + $0xa0] sm:$0xf]  ;;  %v581_v24 = vld [vmem:[%s869_s1 + $0xac] sm:$0xf0] }
   0x7   :  { %v541_v25 = vor.u32 %v584_v20, %v538_v22  ;;  %v579_v26 = vld [vmem:[%s869_s1 + $0xa4] sm:$0xf]  ;;  %v514_v27 = vld [vmem:[%s869_s1 + $0xb0] sm:$0xf0]  ;;  %v520_v28 = vld [vmem:[%s869_s1 + $0xa8] sm:$0xf]  ;;  %v513_v29 = vor.u32 %v581_v24, %v512_v23 }
   0x8   :  { %218 = vmatpush.bf16.msra.mxu0 %v529_v16  ;;  %v582_v30 = vld [vmem:[%s869_s1 + $0xb4] sm:$0xf0]  ;;  %v580_v31 = vld [vmem:[%s869_s1 + $0xac] sm:$0xf]  ;;  %v522_v32 = vld [vmem:[%s869_s1 + $0xb8] sm:$0xf0]  ;;  %v517_v33 = vor.u32 %v579_v26, %v514_v27 }
   0x9   :  { %232 = vmatpush.bf16.msra.mxu1 %v533_v17  ;;  %246 = vmatpush.bf16.msra.mxu2 %v537_v21  ;;  %v521_v34 = vor.u32 %v582_v30, %v520_v28  ;;  %v496_v35 = vld [vmem:[%s869_s1 + $0x80] sm:$0xf]  ;;  %v577_v36 = vld [vmem:[%s869_s1 + $0x8c] sm:$0xf0]  ;;  %v575_v37 = vld [vmem:[%s869_s1 + $0x84] sm:$0xf]  ;;  %v525_v38 = vor.u32 %v580_v31, %v522_v32 }
   0xa   :  { %260 = vmatpush.bf16.msra.mxu3 %v541_v25  ;;  %v498_v39 = vld [vmem:[%s869_s1 + $0x90] sm:$0xf0]  ;;  %v504_v40 = vld [vmem:[%s869_s1 + $0x88] sm:$0xf]  ;;  %v578_v41 = vld [vmem:[%s869_s1 + $0x94] sm:$0xf0]  ;;  %v497_v44 = vor.u32 %v577_v36, %v496_v35 }
   0xb   :  { %v576_v42 = vld [vmem:[%s869_s1 + $0x8c] sm:$0xf]  ;;  %v506_v43 = vld [vmem:[%s869_s1 + $0x98] sm:$0xf0]  ;;  %v501_v45 = vor.u32 %v575_v37, %v498_v39  ;;  %v505_v46 = vor.u32 %v578_v41, %v504_v40  ;;  %v480_v47 = vld [vmem:[%s869_s1 + $0x60] sm:$0xf] }
   0xc   :  { %219 = vmatpush.bf16.msra.mxu0 %v513_v29  ;;  %v573_v48 = vld [vmem:[%s869_s1 + $0x6c] sm:$0xf0]  ;;  %v571_v49 = vld [vmem:[%s869_s1 + $0x64] sm:$0xf]  ;;  %v509_v50 = vor.u32 %v576_v42, %v506_v43  ;;  %v482_v51 = vld [vmem:[%s869_s1 + $0x70] sm:$0xf0] }
   0xd   :  { %233 = vmatpush.bf16.msra.mxu1 %v517_v33  ;;  %247 = vmatpush.bf16.msra.mxu2 %v521_v34  ;;  %v488_v52 = vld [vmem:[%s869_s1 + $0x68] sm:$0xf]  ;;  %v574_v53 = vld [vmem:[%s869_s1 + $0x74] sm:$0xf0]  ;;  %v572_v54 = vld [vmem:[%s869_s1 + $0x6c] sm:$0xf]  ;;  %v481_v56 = vor.u32 %v573_v48, %v480_v47  ;;  %v485_v57 = vor.u32 %v571_v49, %v482_v51 }
   0xe   :  { %261 = vmatpush.bf16.msra.mxu3 %v525_v38  ;;  %v490_v55 = vld [vmem:[%s869_s1 + $0x78] sm:$0xf0]  ;;  %v489_v58 = vor.u32 %v574_v53, %v488_v52  ;;  %v464_v59 = vld [vmem:[%s869_s1 + $0x40] sm:$0xf]  ;;  %v569_v60 = vld [vmem:[%s869_s1 + $0x4c] sm:$0xf0] }
   0xf   :  { %v567_v61 = vld [vmem:[%s869_s1 + $0x44] sm:$0xf]  ;;  %v493_v62 = vor.u32 %v572_v54, %v490_v55  ;;  %v466_v63 = vld [vmem:[%s869_s1 + $0x50] sm:$0xf0]  ;;  %v472_v0 = vld [vmem:[%s869_s1 + $0x48] sm:$0xf]  ;;  %v465_v4 = vor.u32 %v569_v60, %v464_v59 }
  0x10   :  { %220 = vmatpush.bf16.msra.mxu0 %v497_v44  ;;  %v570_v1 = vld [vmem:[%s869_s1 + $0x54] sm:$0xf0]  ;;  %v568_v2 = vld [vmem:[%s869_s1 + $0x4c] sm:$0xf]  ;;  %v474_v3 = vld [vmem:[%s869_s1 + $0x58] sm:$0xf0]  ;;  %v469_v5 = vor.u32 %v567_v61, %v466_v63 }
  0x11   :  { %234 = vmatpush.bf16.msra.mxu1 %v501_v45  ;;  %248 = vmatpush.bf16.msra.mxu2 %v505_v46  ;;  %v473_v6 = vor.u32 %v570_v1, %v472_v0  ;;  %v448_v7 = vld [vmem:[%s869_s1 + $0x20] sm:$0xf]  ;;  %v565_v8 = vld [vmem:[%s869_s1 + $0x2c] sm:$0xf0]  ;;  %v563_v9 = vld [vmem:[%s869_s1 + $0x24] sm:$0xf]  ;;  %v477_v10 = vor.u32 %v568_v2, %v474_v3 }
  0x12   :  { %262 = vmatpush.bf16.msra.mxu3 %v509_v50  ;;  %v450_v11 = vld [vmem:[%s869_s1 + $0x30] sm:$0xf0]  ;;  %v456_v12 = vld [vmem:[%s869_s1 + $0x28] sm:$0xf]  ;;  %v566_v13 = vld [vmem:[%s869_s1 + $0x34] sm:$0xf0]  ;;  %v449_v16 = vor.u32 %v565_v8, %v448_v7 }
  0x13   :  { %v564_v14 = vld [vmem:[%s869_s1 + $0x2c] sm:$0xf]  ;;  %v458_v15 = vld [vmem:[%s869_s1 + $0x38] sm:$0xf0]  ;;  %v453_v17 = vor.u32 %v563_v9, %v450_v11  ;;  %v457_v18 = vor.u32 %v566_v13, %v456_v12  ;;  %v432_v19 = vld [vmem:[%s869_s1] sm:$0xf] }
  0x14   :  { %221 = vmatpush.bf16.msra.mxu0 %v481_v56  ;;  %v561_v20 = vld [vmem:[%s869_s1 + $0xc] sm:$0xf0]  ;;  %v559_v21 = vld [vmem:[%s869_s1 + $0x4] sm:$0xf]  ;;  %v461_v22 = vor.u32 %v564_v14, %v458_v15  ;;  %v434_v23 = vld [vmem:[%s869_s1 + $0x10] sm:$0xf0] }
  0x15   :  { %235 = vmatpush.bf16.msra.mxu1 %v485_v57  ;;  %249 = vmatpush.bf16.msra.mxu2 %v489_v58  ;;  %v440_v24 = vld [vmem:[%s869_s1 + $0x8] sm:$0xf]  ;;  %v562_v25 = vld [vmem:[%s869_s1 + $0x14] sm:$0xf0]  ;;  %v560_v26 = vld [vmem:[%s869_s1 + $0xc] sm:$0xf]  ;;  %v433_v28 = vor.u32 %v561_v20, %v432_v19  ;;  %v437_v29 = vor.u32 %v559_v21, %v434_v23 }
  0x16   :  { %263 = vmatpush.bf16.msra.mxu3 %v493_v62  ;;  %v442_v27 = vld [vmem:[%s869_s1 + $0x18] sm:$0xf0]  ;;  %v441_v30 = vor.u32 %v562_v25, %v440_v24  ;;  %v558_v32 = vld [vmem:[%s870_s0] sm:$0xff]  ;;  %v602_v47 = vmov 512.0   ;;  %v603_v53 = vmov 0   ;;  %v351_v19 = vld [vmem:[%s872_s2 + $0x8] sm:$0xff] }
  0x17   :  { %v445_v31 = vor.u32 %v560_v26, %v442_v27  ;;  %596 = vrcp.f32 %v602_v47  ;;  %v370_v51 = vld [vmem:[%s871_s3] sm:$0xff]  ;;  %594 = vset.pattern.permute.xlu0 %v603_v53  ;;  %595 = vset.pattern.permute.xlu1 %v603_v53  ;;  %v371_v20 = vld [vmem:[%s871_s3 + $0x8] sm:$0xff] }
  0x18   :  { %222 = vmatpush.bf16.msra.mxu0 %v465_v4  ;;  %593 = vset.pattern.permute.xlu2 %v603_v53  ;;  %v350_v13 = vld [vmem:[%s872_s2] sm:$0xff] }
  0x19   :  { %236 = vmatpush.bf16.msra.mxu1 %v469_v5  ;;  %250 = vmatpush.bf16.msra.mxu2 %v473_v6 }
  0x1a   :  { %264 = vmatpush.bf16.msra.mxu3 %v477_v10  ;;  %354 = vperm.xlu2 %593, %v350_v13  }
  0x1c   :  { %223 = vmatpush.bf16.msra.mxu0 %v449_v16 }
  0x1d   :  { %237 = vmatpush.bf16.msra.mxu1 %v453_v17  ;;  %251 = vmatpush.bf16.msra.mxu2 %v457_v18  ;;  %v597_v48 = vpop.eup %596 }
  0x1e   :  { %265 = vmatpush.bf16.msra.mxu3 %v461_v22  ;;  %v284_v49 = vmul.f32 512.0, %v597_v48  ;;  %vm288_vm0 = vweird.f32 %v597_v48 }
  0x20   :  { %224 = vmatpush.bf16.msra.mxu0 %v433_v28  ;;  %v285_v50 = vsub.f32 1.0, %v284_v49 }
  0x21   :  { %238 = vmatpush.bf16.msra.mxu1 %v437_v29  ;;  %252 = vmatpush.bf16.msra.mxu2 %v441_v30 }
  0x22   :  { %266 = vmatpush.bf16.msra.mxu3 %v445_v31  ;;  %v286_v52 = vmul.f32 %v597_v48, %v285_v50  ;;  %359 = vperm.xlu2 %593, %v351_v19  }
  0x23   :  { %225 = vmatmul.bf16.vlgmr.msra.gmra.mxu0 %v558_v32 }
  0x24   :  { %239 = vmatmul.bf16.vlgmr.msra.gmra.mxu1 %v558_v32  ;;  %253 = vmatmul.bf16.vlgmr.msra.gmra.mxu2 %v558_v32  ;;  %v287_v54 = vadd.f32 %v597_v48, %v286_v52 }
  0x25   :  { %267 = vmatmul.bf16.vlgmr.msra.gmra.mxu3 %v558_v32 }
  0x26   :  { %v289_v55 = vsel %vm288_vm0, %v597_v48, %v287_v54 }
  0xa0   :  { %v226_v33 = vpop.f32.mrf.mxu0 }
  0xa1   :  { %v240_v34 = vpop.f32.mrf.mxu1 }
  0xa2   :  { %v273_v35 = vadd.f32 %v240_v34, %v226_v33 }
  0xa7   :  { %v254_v36 = vpop.f32.mrf.mxu2 }
  0xa8   :  { %v274_v37 = vadd.f32 %v273_v35, %v254_v36  ;;  %v268_v38 = vpop.f32.mrf.mxu3  ;;  %v228_v40 = vpop.f32.mrf.mxu0 }
  0xa9   :  { %v242_v41 = vpop.f32.mrf.mxu1 }
  0xaa   :  { %v275_v39 = vadd.f32 %v274_v37, %v268_v38  ;;  %v278_v42 = vadd.f32 %v242_v41, %v228_v40  ;;  %v355_v37 = vpop.permute.xlu2 %354 }
  0xac   :  { %276 = vadd.xlane.f32.xlu0 %v275_v39 }
  0xaf   :  { %v256_v43 = vpop.f32.mrf.mxu2 }
  0xb0   :  { %v279_v44 = vadd.f32 %v278_v42, %v256_v43  ;;  %v270_v45 = vpop.f32.mrf.mxu3 }
  0xb2   :  { %v280_v46 = vadd.f32 %v279_v44, %v270_v45 }
  0xb4   :  { %281 = vadd.xlane.f32.xlu0 %v280_v46 }
  0xc8   :  { %374 = vperm.xlu0 %594, %v370_v51  }
 0x11f   :  { %v277_v56 = vpop.xlane.xlu0 %276 }
 0x120   :  { %v290_v57 = vmul.f32 %v289_v55, %v277_v56 }
 0x122   :  { %v292_v58 = vsub.f32 %v226_v33, %v290_v57  ;;  %v293_v59 = vsub.f32 %v240_v34, %v290_v57  ;;  %v294_v60 = vsub.f32 %v254_v36, %v290_v57  ;;  %v295_v61 = vsub.f32 %v268_v38, %v290_v57 }
 0x124   :  { %v300_v62 = vmul.f32 %v292_v58, %v292_v58  ;;  %v301_v63 = vmul.f32 %v293_v59, %v293_v59  ;;  %v302_v0 = vmul.f32 %v294_v60, %v294_v60  ;;  %v303_v4 = vmul.f32 %v295_v61, %v295_v61 }
 0x126   :  { %v308_v1 = vadd.f32 %v301_v63, %v300_v62  ;;  %v360_v62 = vpop.permute.xlu2 %359 }
 0x127   :  { %v282_v2 = vpop.xlane.xlu0 %281 }
 0x128   :  { %v291_v3 = vmul.f32 %v289_v55, %v282_v2  ;;  %v309_v5 = vadd.f32 %v308_v1, %v302_v0 }
 0x12a   :  { %v827_v6 = vsub.f32 %v228_v40, %v291_v3  ;;  %v829_v7 = vsub.f32 %v242_v41, %v291_v3  ;;  %v310_v8 = vadd.f32 %v309_v5, %v303_v4  ;;  %v831_v9 = vsub.f32 %v256_v43, %v291_v3 }
 0x12b   :  { %v833_v10 = vsub.f32 %v270_v45, %v291_v3 }
 0x12c   :  { %311 = vadd.xlane.f32.xlu1 %v310_v8  ;;  %v304_v11 = vmul.f32 %v827_v6, %v827_v6  ;;  %v305_v12 = vmul.f32 %v829_v7, %v829_v7  ;;  %v306_v14 = vmul.f32 %v831_v9, %v831_v9 }
 0x12d   :  { %v307_v16 = vmul.f32 %v833_v10, %v833_v10 }
 0x12e   :  { %v313_v15 = vadd.f32 %v305_v12, %v304_v11 }
 0x130   :  { %v314_v17 = vadd.f32 %v313_v15, %v306_v14 }
 0x132   :  { %v315_v18 = vadd.f32 %v314_v17, %v307_v16 }
 0x134   :  { %316 = vadd.xlane.f32.xlu1 %v315_v18 }
 0x13a   :  { %v375_v43 = vpop.permute.xlu0 %374 }
 0x14d   :  { %379 = vperm.xlu1 %595, %v371_v20  }
 0x19f   :  { %v312_v21 = vpop.xlane.xlu1 %311 }
 0x1a0   :  { %v318_v22 = vmul.f32 %v312_v21, %v289_v55 }
 0x1a2   :  { %v320_v23 = vadd.f32 1e-05, %v318_v22 }
 0x1a4   :  { %598 = vrsqrt.f32 %v320_v23  ;;  %vm328_vm2 = vweird.f32 %v320_v23 }
 0x1a7   :  { %v317_v24 = vpop.xlane.xlu1 %316 }
 0x1a8   :  { %v319_v25 = vmul.f32 %v317_v24, %v289_v55 }
 0x1aa   :  { %v599_v26 = vpop.eup %598  ;;  %v321_v27 = vadd.f32 1e-05, %v319_v25 }
 0x1ab   :  { %v323_v28 = vmul.f32 %v599_v26, %v320_v23  ;;  %vm329_vm1 = vweird.f32 %v599_v26 }
 0x1ac   :  { %600 = vrsqrt.f32 %v321_v27  ;;  %vm330_vm3 = vmor %vm328_vm2, %vm329_vm1  ;;  %vm338_vm5 = vweird.f32 %v321_v27 }
 0x1ad   :  { %v324_v29 = vmul.f32 %v599_v26, %v323_v28 }
 0x1af   :  { %v325_v30 = vmul.f32 0.5, %v324_v29 }
 0x1b1   :  { %v326_v31 = vsub.f32 1.5, %v325_v30 }
 0x1b2   :  { %v601_v32 = vpop.eup %600 }
 0x1b3   :  { %v327_v33 = vmul.f32 %v599_v26, %v326_v31  ;;  %v333_v34 = vmul.f32 %v601_v32, %v321_v27  ;;  %vm339_vm4 = vweird.f32 %v601_v32 }
 0x1b4   :  { %vm340_vm6 = vmor %vm338_vm5, %vm339_vm4 }
 0x1b5   :  { %v331_v35 = vsel %vm330_vm3, %v599_v26, %v327_v33  ;;  %v334_v36 = vmul.f32 %v601_v32, %v333_v34 }
 0x1b6   :  { %v342_v38 = vmul.f32 %v331_v35, %v292_v58  ;;  %v343_v39 = vmul.f32 %v331_v35, %v293_v59  ;;  %v344_v40 = vmul.f32 %v331_v35, %v294_v60  ;;  %v345_v41 = vmul.f32 %v331_v35, %v295_v61 }
 0x1b7   :  { %v335_v42 = vmul.f32 0.5, %v334_v36 }
 0x1b8   :  { %v362_v44 = vmul.f32 %v355_v37, %v342_v38  ;;  %v363_v45 = vmul.f32 %v355_v37, %v343_v39  ;;  %v364_v46 = vmul.f32 %v355_v37, %v344_v40  ;;  %v365_v47 = vmul.f32 %v355_v37, %v345_v41 }
 0x1b9   :  { %v336_v48 = vsub.f32 1.5, %v335_v42 }
 0x1ba   :  { %v382_v49 = vadd.f32 %v375_v43, %v362_v44  ;;  %v383_v50 = vadd.f32 %v375_v43, %v363_v45  ;;  %v384_v51 = vadd.f32 %v375_v43, %v364_v46  ;;  %v385_v52 = vadd.f32 %v375_v43, %v365_v47 }
 0x1bb   :  { %v337_v53 = vmul.f32 %v601_v32, %v336_v48 }
 0x1bc   :  { %vm390_vm7 = vcmp.gt.f32.partialorder %v382_v49, 0.0  ;;  %vm391_vm8 = vcmp.gt.f32.partialorder %v383_v50, 0.0  ;;  %vm392_vm9 = vcmp.gt.f32.partialorder %v384_v51, 0.0  ;;  %vm393_vm10 = vcmp.gt.f32.partialorder %v385_v52, 0.0 }
 0x1bd   :  { %v341_v54 = vsel %vm340_vm6, %v601_v32, %v337_v53  ;;  %v398_v55 = vmul.f32 0.2, %v382_v49  ;;  %v399_v56 = vmul.f32 0.2, %v383_v50  ;;  %v400_v57 = vmul.f32 0.2, %v384_v51 }
 0x1be   :  { %v346_v58 = vmul.f32 %v341_v54, %v827_v6  ;;  %v347_v59 = vmul.f32 %v341_v54, %v829_v7  ;;  %v348_v60 = vmul.f32 %v341_v54, %v831_v9  ;;  %v349_v61 = vmul.f32 %v341_v54, %v833_v10 }
 0x1bf   :  { %v401_v63 = vmul.f32 0.2, %v385_v52  ;;  %v406_v0 = vsel %vm390_vm7, %v382_v49, %v398_v55  ;;  %v407_v1 = vsel %vm391_vm8, %v383_v50, %v399_v56  ;;  %v408_v2 = vsel %vm392_vm9, %v384_v51, %v400_v57  ;;  %v380_v3 = vpop.permute.xlu1 %379 }
 0x1c0   :  { %v366_v4 = vmul.f32 %v360_v62, %v346_v58  ;;  %v367_v5 = vmul.f32 %v360_v62, %v347_v59  ;;  %v368_v8 = vmul.f32 %v360_v62, %v348_v60  ;;  %v369_v11 = vmul.f32 %v360_v62, %v349_v61 }
 0x1c1   :  { %v409_v12 = vsel %vm393_vm10, %v385_v52, %v401_v63  ;;  %v414_v13 = vpack.c.bf16 %v407_v1, %v406_v0 }
 0x1c2   :  { %v415_v6 = vpack.c.bf16 %v409_v12, %v408_v2  ;;  %v386_v14 = vadd.f32 %v380_v3, %v366_v4  ;;  %v387_v7 = vadd.f32 %v380_v3, %v367_v5  ;;  %v388_v15 = vadd.f32 %v380_v3, %v368_v8 }
 0x1c3   :  { %418 = vst [vmem:[%s873_s4] sm:$0xff] %v414_v13  ;;  %v389_v9 = vadd.f32 %v380_v3, %v369_v11 }
 0x1c4   :  { %419 = vst [vmem:[%s873_s4 + $0x8] sm:$0xff] %v415_v6  ;;  %vm394_vm11 = vcmp.gt.f32.partialorder %v386_v14, 0.0  ;;  %vm395_vm12 = vcmp.gt.f32.partialorder %v387_v7, 0.0  ;;  %vm396_vm13 = vcmp.gt.f32.partialorder %v388_v15, 0.0  ;;  %v402_v10 = vmul.f32 0.2, %v386_v14 }
 0x1c5   :  { %vm397_vm14 = vcmp.gt.f32.partialorder %v389_v9, 0.0  ;;  %v403_v16 = vmul.f32 0.2, %v387_v7  ;;  %v404_v17 = vmul.f32 0.2, %v388_v15 }
 0x1c6   :  { %v405_v18 = vmul.f32 0.2, %v389_v9  ;;  %v410_v19 = vsel %vm394_vm11, %v386_v14, %v402_v10 }
 0x1c7   :  { %v411_v20 = vsel %vm395_vm12, %v387_v7, %v403_v16  ;;  %v412_v21 = vsel %vm396_vm13, %v388_v15, %v404_v17 }
 0x1c8   :  { %v413_v22 = vsel %vm397_vm14, %v389_v9, %v405_v18  ;;  %v416_v23 = vpack.c.bf16 %v411_v20, %v410_v19 }
 0x1c9   :  { %v417_v24 = vpack.c.bf16 %v413_v22, %v412_v21 }
 0x1ca   :  { %420 = vst [vmem:[%s873_s4 + $0x10] sm:$0xff] %v416_v23 }
 0x1cb   :  { %421 = vst [vmem:[%s873_s4 + $0x18] sm:$0xff] %v417_v24 }

// kernel: dcgan_discriminator64_forward.7
= control target key start
LH: loop header
LB: loop body
LE: loop exit
PB: predicated region body
PF: predicated region fallthrough
CT: control target
= control target key end

     0   :  { %v516_v29 = vmov 0   ;;  %v517_v44 = vmov 128.0   ;;  %s676_s1 = inlined_call_operand.vmem [shape: bf16[256,128], index: 1, kind: input, shape index: {}]   ;;  %s677_s0 = inlined_call_operand.vmem [shape: bf16[32,256], index: 0, kind: input, shape index: {}]   ;;  %s678_s2 = inlined_call_operand.vmem [shape: f32[32,1], index: 2, kind: input, shape index: {}]   ;;  %s679_s3 = inlined_call_operand.vmem [shape: f32[32,1], index: 3, kind: input, shape index: {}]   ;;  %s680_s4 = inlined_call_operand.vmem [shape: bf16[32,128], index: 4, kind: output, shape index: {}]  }
   0x1   :  { %v465_v0 = vld [vmem:[%s676_s1 + $0x38] sm:$0xff]  ;;  %v464_v2 = vld [vmem:[%s676_s1 + $0x30] sm:$0xff]  ;;  %v463_v4 = vld [vmem:[%s676_s1 + $0x28] sm:$0xff]  ;;  %503 = vset.pattern.permute.xlu2 %v516_v29  ;;  %505 = vset.pattern.permute.xlu1 %v516_v29  ;;  %506 = vrcp.f32 %v517_v44 }
   0x2   :  { %v473_v1 = vld [vmem:[%s676_s1 + $0x78] sm:$0xff]  ;;  %169 = vmatpush.bf16.msra.mxu0 %v465_v0  ;;  %485 = vmatpush.bf16.msra.mxu2 %v465_v0  ;;  %v472_v3 = vld [vmem:[%s676_s1 + $0x70] sm:$0xff]  ;;  %v471_v5 = vld [vmem:[%s676_s1 + $0x68] sm:$0xff] }
   0x3   :  { %188 = vmatpush.bf16.msra.mxu1 %v473_v1  ;;  %493 = vmatpush.bf16.msra.mxu3 %v473_v1  ;;  %v462_v6 = vld [vmem:[%s676_s1 + $0x20] sm:$0xff]  ;;  %v461_v8 = vld [vmem:[%s676_s1 + $0x18] sm:$0xff]  ;;  %v460_v10 = vld [vmem:[%s676_s1 + $0x10] sm:$0xff] }
   0x4   :  { %v470_v7 = vld [vmem:[%s676_s1 + $0x60] sm:$0xff]  ;;  %v469_v9 = vld [vmem:[%s676_s1 + $0x58] sm:$0xff]  ;;  %v468_v11 = vld [vmem:[%s676_s1 + $0x50] sm:$0xff]  ;;  %504 = vset.pattern.permute.xlu0 %v516_v29 }
   0x5   :  { %v459_v12 = vld [vmem:[%s676_s1 + $0x8] sm:$0xff]  ;;  %v458_v14 = vld [vmem:[%s676_s1] sm:$0xff]  ;;  %v384_v18 = vld [vmem:[%s677_s0 + $0x10] sm:$0xf] }
   0x6   :  { %170 = vmatpush.bf16.msra.mxu0 %v464_v2  ;;  %486 = vmatpush.bf16.msra.mxu2 %v464_v2  ;;  %v467_v13 = vld [vmem:[%s676_s1 + $0x48] sm:$0xff]  ;;  %v466_v15 = vld [vmem:[%s676_s1 + $0x40] sm:$0xff]  ;;  %v457_v19 = vld [vmem:[%s677_s0 + $0x14] sm:$0xf0] }
   0x7   :  { %189 = vmatpush.bf16.msra.mxu1 %v472_v3  ;;  %494 = vmatpush.bf16.msra.mxu3 %v472_v3  ;;  %v376_v16 = vld [vmem:[%s677_s0] sm:$0xf]  ;;  %v455_v17 = vld [vmem:[%s677_s0 + $0x4] sm:$0xf0]  ;;  %v454_v20 = vld [vmem:[%s677_s0 + $0x4] sm:$0xf]  ;;  %v385_v25 = vor.u32 %v457_v19, %v384_v18  ;;  %v507_v45 = vpop.eup %506 }
   0x8   :  { %v378_v21 = vld [vmem:[%s677_s0 + $0x8] sm:$0xf0]  ;;  %v456_v22 = vld [vmem:[%s677_s0 + $0x14] sm:$0xf]  ;;  %v386_v23 = vld [vmem:[%s677_s0 + $0x18] sm:$0xf0]  ;;  %v377_v24 = vor.u32 %v455_v17, %v376_v16  ;;  %vm220_vm0 = vweird.f32 %v507_v45 }
   0x9   :  { %v381_v26 = vor.u32 %v454_v20, %v378_v21  ;;  %v389_v27 = vor.u32 %v456_v22, %v386_v23  ;;  %v294_v28 = vld [vmem:[%s678_s2] sm:$0xff]  ;;  %v296_v42 = vld [vmem:[%s678_s2 + $0x10] sm:$0xff]  ;;  %v323_v43 = vld [vmem:[%s679_s3 + $0x8] sm:$0xff]  ;;  %v216_v46 = vmul.f32 128.0, %v507_v45 }
   0xa   :  { %171 = vmatpush.bf16.msra.mxu0 %v463_v4  ;;  %487 = vmatpush.bf16.msra.mxu2 %v463_v4  ;;  %v297_v63 = vld [vmem:[%s678_s2 + $0x18] sm:$0xff]  ;;  %v322_v0 = vld [vmem:[%s679_s3] sm:$0xff]  ;;  %v295_v4 = vld [vmem:[%s678_s2 + $0x8] sm:$0xff] }
   0xb   :  { %190 = vmatpush.bf16.msra.mxu1 %v471_v5  ;;  %495 = vmatpush.bf16.msra.mxu3 %v471_v5  ;;  %v217_v47 = vsub.f32 1.0, %v216_v46  ;;  %v325_v1 = vld [vmem:[%s679_s3 + $0x18] sm:$0xff] }
   0xc   :  { %300 = vperm.xlu2 %503, %v294_v28  }
   0xd   :  { %v218_v48 = vmul.f32 %v507_v45, %v217_v47 }
   0xe   :  { %172 = vmatpush.bf16.msra.mxu0 %v462_v6  ;;  %488 = vmatpush.bf16.msra.mxu2 %v462_v6 }
   0xf   :  { %191 = vmatpush.bf16.msra.mxu1 %v470_v7  ;;  %496 = vmatpush.bf16.msra.mxu3 %v470_v7  ;;  %v219_v49 = vadd.f32 %v507_v45, %v218_v48  ;;  %v324_v7 = vld [vmem:[%s679_s3 + $0x10] sm:$0xff] }
  0x11   :  { %v624_v50 = vsel %vm220_vm0, %v507_v45, %v219_v49 }
  0x12   :  { %173 = vmatpush.bf16.msra.mxu0 %v461_v8  ;;  %489 = vmatpush.bf16.msra.mxu2 %v461_v8 }
  0x13   :  { %192 = vmatpush.bf16.msra.mxu1 %v469_v9  ;;  %497 = vmatpush.bf16.msra.mxu3 %v469_v9 }
  0x16   :  { %174 = vmatpush.bf16.msra.mxu0 %v460_v10  ;;  %490 = vmatpush.bf16.msra.mxu2 %v460_v10 }
  0x17   :  { %193 = vmatpush.bf16.msra.mxu1 %v468_v11  ;;  %498 = vmatpush.bf16.msra.mxu3 %v468_v11 }
  0x1a   :  { %175 = vmatpush.bf16.msra.mxu0 %v459_v12  ;;  %491 = vmatpush.bf16.msra.mxu2 %v459_v12 }
  0x1b   :  { %194 = vmatpush.bf16.msra.mxu1 %v467_v13  ;;  %499 = vmatpush.bf16.msra.mxu3 %v467_v13 }
  0x1e   :  { %176 = vmatpush.bf16.msra.mxu0 %v458_v14  ;;  %492 = vmatpush.bf16.msra.mxu2 %v458_v14 }
  0x1f   :  { %195 = vmatpush.bf16.msra.mxu1 %v466_v15  ;;  %500 = vmatpush.bf16.msra.mxu3 %v466_v15 }
  0x21   :  { %177 = vmatmul.bf16.vlgmr.msra.gmra.mxu0 %v377_v24  ;;  %182 = vmatmul.bf16.vlgmr.msra.gmra.mxu2 %v385_v25 }
  0x22   :  { %196 = vmatmul.bf16.vlgmr.msra.gmra.mxu1 %v381_v26  ;;  %201 = vmatmul.bf16.vlgmr.msra.gmra.mxu3 %v389_v27 }
  0x66   :  { %v661_v15 = vpop.permute.xlu2 %300 }
  0x9e   :  { %v178_v30 = vpop.f32.mrf.mxu0 }
  0x9f   :  { %v197_v31 = vpop.f32.mrf.mxu1 }
  0xa0   :  { %v198_v32 = vadd.f32 %v197_v31, %v178_v30 }
  0xa2   :  { %207 = vadd.xlane.f32.xlu0 %v198_v32 }
  0xa4   :  { %v183_v33 = vpop.f32.mrf.mxu2 }
  0xa5   :  { %v202_v34 = vpop.f32.mrf.mxu3 }
  0xa6   :  { %v203_v35 = vadd.f32 %v202_v34, %v183_v33  ;;  %v180_v36 = vpop.f32.mrf.mxu0 }
  0xa7   :  { %v199_v37 = vpop.f32.mrf.mxu1 }
  0xa8   :  { %v200_v38 = vadd.f32 %v199_v37, %v180_v36  ;;  %211 = vadd.xlane.f32.xlu1 %v203_v35 }
  0xaa   :  { %209 = vadd.xlane.f32.xlu0 %v200_v38 }
  0xac   :  { %v185_v39 = vpop.f32.mrf.mxu2 }
  0xad   :  { %v204_v40 = vpop.f32.mrf.mxu3 }
  0xae   :  { %v205_v41 = vadd.f32 %v204_v40, %v185_v39 }
  0xb0   :  { %213 = vadd.xlane.f32.xlu1 %v205_v41 }
  0xc9   :  { %310 = vperm.xlu1 %505, %v296_v42  }
  0xd1   :  { %333 = vperm.xlu1 %505, %v323_v43  }
 0x115   :  { %v208_v51 = vpop.xlane.xlu0 %207 }
 0x116   :  { %v222_v52 = vmul.f32 %v624_v50, %v208_v51 }
 0x118   :  { %v627_v53 = vsub.f32 %v198_v32, %v222_v52 }
 0x11a   :  { %v230_v54 = vmul.f32 %v627_v53, %v627_v53 }
 0x11b   :  { %v212_v55 = vpop.xlane.xlu1 %211 }
 0x11c   :  { %v224_v56 = vmul.f32 %v624_v50, %v212_v55  ;;  %234 = vadd.xlane.f32.xlu2 %v230_v54 }
 0x11d   :  { %v210_v2 = vpop.xlane.xlu0 %209 }
 0x11e   :  { %v632_v57 = vsub.f32 %v203_v35, %v224_v56  ;;  %v223_v3 = vmul.f32 %v624_v50, %v210_v2 }
 0x120   :  { %v232_v58 = vmul.f32 %v632_v57, %v632_v57  ;;  %v650_v5 = vsub.f32 %v200_v38, %v223_v3 }
 0x122   :  { %238 = vadd.xlane.f32.xlu0 %v232_v58  ;;  %v231_v6 = vmul.f32 %v650_v5, %v650_v5 }
 0x123   :  { %v214_v59 = vpop.xlane.xlu1 %213 }
 0x124   :  { %v225_v60 = vmul.f32 %v624_v50, %v214_v59 }
 0x126   :  { %v229_v61 = vsub.f32 %v205_v41, %v225_v60 }
 0x128   :  { %v233_v62 = vmul.f32 %v229_v61, %v229_v61 }
 0x12a   :  { %240 = vadd.xlane.f32.xlu1 %v233_v62 }
 0x134   :  { %315 = vperm.xlu2 %503, %v297_v63  }
 0x136   :  { %305 = vperm.xlu0 %504, %v295_v4  }
 0x13b   :  { %v311_v8 = vpop.permute.xlu1 %310 }
 0x13c   :  { %328 = vperm.xlu2 %503, %v322_v0  }
 0x143   :  { %343 = vperm.xlu1 %505, %v325_v1   ;;  %v657_v9 = vpop.permute.xlu1 %333 }
 0x165   :  { %236 = vadd.xlane.f32.xlu2 %v231_v6 }
 0x17d   :  { %338 = vperm.xlu2 %503, %v324_v7  }
 0x18f   :  { %v235_v18 = vpop.xlane.xlu2 %234 }
 0x190   :  { %v242_v20 = vmul.f32 %v235_v18, %v624_v50 }
 0x192   :  { %v246_v23 = vadd.f32 1e-05, %v242_v20 }
 0x194   :  { %vm256_vm8 = vweird.f32 %v246_v23 }
 0x195   :  { %v239_v12 = vpop.xlane.xlu0 %238 }
 0x196   :  { %v244_v14 = vmul.f32 %v239_v12, %v624_v50 }
 0x197   :  { %v316_v25 = vpop.permute.xlu2 %315 }
 0x198   :  { %v248_v16 = vadd.f32 1e-05, %v244_v14 }
 0x19a   :  { %vm276_vm5 = vweird.f32 %v248_v16 }
 0x19d   :  { %v241_v10 = vpop.xlane.xlu1 %240 }
 0x19e   :  { %v245_v11 = vmul.f32 %v241_v10, %v624_v50 }
 0x19f   :  { %v329_v34 = vpop.permute.xlu2 %328 }
 0x1a0   :  { %v249_v13 = vadd.f32 1e-05, %v245_v11 }
 0x1a2   :  { %508 = vrsqrt.f32 %v249_v13  ;;  %vm286_vm2 = vweird.f32 %v249_v13 }
 0x1a3   :  { %510 = vrsqrt.f32 %v248_v16 }
 0x1a4   :  { %512 = vrsqrt.f32 %v246_v23 }
 0x1a8   :  { %v509_v17 = vpop.eup %508  ;;  %v306_v6 = vpop.permute.xlu0 %305 }
 0x1a9   :  { %v281_v19 = vmul.f32 %v509_v17, %v249_v13  ;;  %v511_v21 = vpop.eup %510  ;;  %vm287_vm1 = vweird.f32 %v509_v17 }
 0x1aa   :  { %v271_v24 = vmul.f32 %v511_v21, %v248_v16  ;;  %v513_v30 = vpop.eup %512  ;;  %vm288_vm3 = vmor %vm286_vm2, %vm287_vm1  ;;  %vm277_vm4 = vweird.f32 %v511_v21 }
 0x1ab   :  { %v282_v22 = vmul.f32 %v509_v17, %v281_v19  ;;  %v251_v32 = vmul.f32 %v513_v30, %v246_v23  ;;  %vm278_vm6 = vmor %vm276_vm5, %vm277_vm4  ;;  %vm257_vm7 = vweird.f32 %v513_v30 }
 0x1ac   :  { %v272_v27 = vmul.f32 %v511_v21, %v271_v24  ;;  %vm258_vm10 = vmor %vm256_vm8, %vm257_vm7 }
 0x1ad   :  { %v283_v26 = vmul.f32 0.5, %v282_v22  ;;  %v252_v36 = vmul.f32 %v513_v30, %v251_v32 }
 0x1ae   :  { %v273_v29 = vmul.f32 0.5, %v272_v27 }
 0x1af   :  { %v284_v28 = vsub.f32 1.5, %v283_v26  ;;  %v253_v39 = vmul.f32 0.5, %v252_v36 }
 0x1b0   :  { %v274_v33 = vsub.f32 1.5, %v273_v29 }
 0x1b1   :  { %v285_v31 = vmul.f32 %v509_v17, %v284_v28  ;;  %v254_v46 = vsub.f32 1.5, %v253_v39 }
 0x1b2   :  { %v275_v37 = vmul.f32 %v511_v21, %v274_v33 }
 0x1b3   :  { %v289_v35 = vsel %vm288_vm3, %v509_v17, %v285_v31  ;;  %v255_v51 = vmul.f32 %v513_v30, %v254_v46 }
 0x1b4   :  { %v293_v38 = vmul.f32 %v289_v35, %v229_v61  ;;  %v279_v41 = vsel %vm278_vm6, %v511_v21, %v275_v37 }
 0x1b5   :  { %v292_v45 = vmul.f32 %v279_v41, %v632_v57  ;;  %v344_v47 = vpop.permute.xlu1 %343 }
 0x1b6   :  { %v321_v42 = vmul.f32 %v316_v25, %v293_v38 }
 0x1b7   :  { %v320_v49 = vmul.f32 %v311_v8, %v292_v45 }
 0x1b8   :  { %v349_v48 = vadd.f32 %v344_v47, %v321_v42 }
 0x1ba   :  { %v357_v54 = vmul.f32 0.2, %v349_v48  ;;  %vm353_vm9 = vcmp.gt.f32.partialorder %v349_v48, 0.0 }
 0x1bc   :  { %v361_v60 = vsel %vm353_vm9, %v349_v48, %v357_v54 }
 0x1d8   :  { %v237_v40 = vpop.xlane.xlu2 %236 }
 0x1d9   :  { %v243_v43 = vmul.f32 %v237_v40, %v624_v50  ;;  %v259_v50 = vsel %vm258_vm10, %v513_v30, %v255_v51 }
 0x1da   :  { %v290_v63 = vmul.f32 %v259_v50, %v627_v53 }
 0x1db   :  { %v247_v44 = vadd.f32 1e-05, %v243_v43 }
 0x1dc   :  { %v318_v2 = vmul.f32 %v661_v15, %v290_v63 }
 0x1dd   :  { %514 = vrsqrt.f32 %v247_v44  ;;  %vm266_vm13 = vweird.f32 %v247_v44 }
 0x1de   :  { %v346_v7 = vadd.f32 %v329_v34, %v318_v2 }
 0x1e0   :  { %v339_v52 = vpop.permute.xlu2 %338  ;;  %v354_v11 = vmul.f32 0.2, %v346_v7  ;;  %vm350_vm15 = vcmp.gt.f32.partialorder %v346_v7, 0.0 }
 0x1e1   :  { %v348_v55 = vadd.f32 %v339_v52, %v320_v49 }
 0x1e2   :  { %v358_v13 = vsel %vm350_vm15, %v346_v7, %v354_v11 }
 0x1e3   :  { %v515_v56 = vpop.eup %514  ;;  %vm352_vm11 = vcmp.gt.f32.partialorder %v348_v55, 0.0  ;;  %v356_v58 = vmul.f32 0.2, %v348_v55 }
 0x1e4   :  { %v261_v59 = vmul.f32 %v515_v56, %v247_v44  ;;  %vm267_vm12 = vweird.f32 %v515_v56 }
 0x1e5   :  { %v360_v57 = vsel %vm352_vm11, %v348_v55, %v356_v58  ;;  %vm268_vm14 = vmor %vm266_vm13, %vm267_vm12 }
 0x1e6   :  { %v262_v61 = vmul.f32 %v515_v56, %v261_v59  ;;  %v482_v62 = vpack.c.bf16 %v361_v60, %v360_v57 }
 0x1e8   :  { %v263_v0 = vmul.f32 0.5, %v262_v61  ;;  %484 = vst [vmem:[%s680_s4 + $0x8] sm:$0xff] %v482_v62  }
 0x1ea   :  { %v264_v1 = vsub.f32 1.5, %v263_v0 }
 0x1ec   :  { %v265_v3 = vmul.f32 %v515_v56, %v264_v1 }
 0x1ee   :  { %v269_v4 = vsel %vm268_vm14, %v515_v56, %v265_v3 }
 0x1ef   :  { %v291_v8 = vmul.f32 %v269_v4, %v650_v5 }
 0x1f1   :  { %v319_v10 = vmul.f32 %v306_v6, %v291_v8 }
 0x1f3   :  { %v347_v53 = vadd.f32 %v657_v9, %v319_v10 }
 0x1f5   :  { %vm351_vm0 = vcmp.gt.f32.partialorder %v347_v53, 0.0  ;;  %v355_v12 = vmul.f32 0.2, %v347_v53 }
 0x1f7   :  { %v359_v14 = vsel %vm351_vm0, %v347_v53, %v355_v12 }
 0x1f8   :  { %v477_v16 = vpack.c.bf16 %v359_v14, %v358_v13 }
 0x1fa   :  { %478 = vst [vmem:[%s680_s4] sm:$0xff] %v477_v16  }

// kernel: dcgan_discriminator64_forward.8
= control target key start
LH: loop header
LB: loop body
LE: loop exit
PB: predicated region body
PF: predicated region fallthrough
CT: control target
= control target key end

     0   :  { %v1089_v58 = vmov 0   ;;  %vm485_vm0 = vcmask 261120   ;;  %vm813_vm9 = vcmask 257024   ;;  %s1533_s1 = inlined_call_operand.vmem [shape: bf16[512,32], index: 1, kind: input, shape index: {}]   ;;  %s1534_s0 = inlined_call_operand.vmem [shape: bf16[64,512], index: 0, kind: input, shape index: {}]   ;;  %s1535_s2 = inlined_call_operand.vmem [shape: f32[64,1], index: 2, kind: input, shape index: {}]   ;;  %s1536_s3 = inlined_call_operand.vmem [shape: f32[64,1], index: 3, kind: input, shape index: {}]   ;;  %s1537_s4 = inlined_call_operand.vmem [shape: bf16[64,32], index: 4, kind: output, shape index: {}]  }
   0x1   :  { %v1041_v0 = vld [vmem:[%s1533_s1 + $0x38] sm:$0xff]  ;;  %v1040_v4 = vld [vmem:[%s1533_s1 + $0x30] sm:$0xff]  ;;  %v1039_v8 = vld [vmem:[%s1533_s1 + $0x28] sm:$0xff]  ;;  %1070 = vset.pattern.permute.xlu0 %v1089_v58  ;;  %1068 = vset.pattern.permute.xlu1 %v1089_v58 }
   0x2   :  { %v1049_v1 = vld [vmem:[%s1533_s1 + $0x78] sm:$0xff]  ;;  %369 = vmatpush.bf16.msra.mxu0 %v1041_v0  ;;  %v1048_v5 = vld [vmem:[%s1533_s1 + $0x70] sm:$0xff]  ;;  %v1047_v9 = vld [vmem:[%s1533_s1 + $0x68] sm:$0xff]  ;;  %1069 = vset.pattern.permute.xlu2 %v1089_v58 }
   0x3   :  { %v1057_v2 = vld [vmem:[%s1533_s1 + $0xb8] sm:$0xff]  ;;  %398 = vmatpush.bf16.msra.mxu1 %v1049_v1  ;;  %v1056_v6 = vld [vmem:[%s1533_s1 + $0xb0] sm:$0xff]  ;;  %v1055_v10 = vld [vmem:[%s1533_s1 + $0xa8] sm:$0xff] }
   0x4   :  { %v1065_v3 = vld [vmem:[%s1533_s1 + $0xf8] sm:$0xff]  ;;  %427 = vmatpush.bf16.msra.mxu2 %v1057_v2  ;;  %v1064_v7 = vld [vmem:[%s1533_s1 + $0xf0] sm:$0xff]  ;;  %v1063_v11 = vld [vmem:[%s1533_s1 + $0xe8] sm:$0xff] }
   0x5   :  { %456 = vmatpush.bf16.msra.mxu3 %v1065_v3  ;;  %v1038_v12 = vld [vmem:[%s1533_s1 + $0x20] sm:$0xff]  ;;  %v1037_v16 = vld [vmem:[%s1533_s1 + $0x18] sm:$0xff]  ;;  %v1036_v20 = vld [vmem:[%s1533_s1 + $0x10] sm:$0xff] }
   0x6   :  { %370 = vmatpush.bf16.msra.mxu0 %v1040_v4  ;;  %v1046_v13 = vld [vmem:[%s1533_s1 + $0x60] sm:$0xff]  ;;  %v1045_v17 = vld [vmem:[%s1533_s1 + $0x58] sm:$0xff]  ;;  %v1044_v21 = vld [vmem:[%s1533_s1 + $0x50] sm:$0xff] }
   0x7   :  { %399 = vmatpush.bf16.msra.mxu1 %v1048_v5  ;;  %v1054_v14 = vld [vmem:[%s1533_s1 + $0xa0] sm:$0xff]  ;;  %v1053_v18 = vld [vmem:[%s1533_s1 + $0x98] sm:$0xff]  ;;  %v1052_v22 = vld [vmem:[%s1533_s1 + $0x90] sm:$0xff] }
   0x8   :  { %428 = vmatpush.bf16.msra.mxu2 %v1056_v6  ;;  %v1062_v15 = vld [vmem:[%s1533_s1 + $0xe0] sm:$0xff]  ;;  %v1061_v19 = vld [vmem:[%s1533_s1 + $0xd8] sm:$0xff]  ;;  %v1060_v23 = vld [vmem:[%s1533_s1 + $0xd0] sm:$0xff] }
   0x9   :  { %457 = vmatpush.bf16.msra.mxu3 %v1064_v7  ;;  %v1035_v24 = vld [vmem:[%s1533_s1 + $0x8] sm:$0xff]  ;;  %v1034_v28 = vld [vmem:[%s1533_s1] sm:$0xff]  ;;  %v1020_v33 = vld [vmem:[%s1534_s0 + $0xc] sm:$0xf0] }
   0xa   :  { %371 = vmatpush.bf16.msra.mxu0 %v1039_v8  ;;  %v1043_v25 = vld [vmem:[%s1533_s1 + $0x48] sm:$0xff]  ;;  %v1042_v29 = vld [vmem:[%s1533_s1 + $0x40] sm:$0xff]  ;;  %v830_v35 = vld [vmem:[%s1534_s0 + $0x10] sm:$0xf0] }
   0xb   :  { %400 = vmatpush.bf16.msra.mxu1 %v1047_v9  ;;  %v1051_v26 = vld [vmem:[%s1533_s1 + $0x88] sm:$0xff]  ;;  %v1050_v30 = vld [vmem:[%s1533_s1 + $0x80] sm:$0xff]  ;;  %v1021_v37 = vld [vmem:[%s1534_s0 + $0x14] sm:$0xf0] }
   0xc   :  { %429 = vmatpush.bf16.msra.mxu2 %v1055_v10  ;;  %v1059_v27 = vld [vmem:[%s1533_s1 + $0xc8] sm:$0xff]  ;;  %v1058_v31 = vld [vmem:[%s1533_s1 + $0xc0] sm:$0xff]  ;;  %v838_v39 = vld [vmem:[%s1534_s0 + $0x18] sm:$0xf0] }
   0xd   :  { %458 = vmatpush.bf16.msra.mxu3 %v1063_v11  ;;  %v828_v32 = vld [vmem:[%s1534_s0] sm:$0xf]  ;;  %v1018_v34 = vld [vmem:[%s1534_s0 + $0x4] sm:$0xf]  ;;  %v836_v36 = vld [vmem:[%s1534_s0 + $0x8] sm:$0xf] }
   0xe   :  { %372 = vmatpush.bf16.msra.mxu0 %v1038_v12  ;;  %v1019_v38 = vld [vmem:[%s1534_s0 + $0xc] sm:$0xf]  ;;  %v829_v40 = vor.u32 %v1020_v33, %v828_v32  ;;  %v833_v41 = vor.u32 %v1018_v34, %v830_v35  ;;  %v837_v42 = vor.u32 %v1021_v37, %v836_v36  ;;  %v844_v44 = vld [vmem:[%s1534_s0 + $0x20] sm:$0xf]  ;;  %v1024_v45 = vld [vmem:[%s1534_s0 + $0x2c] sm:$0xf0] }
   0xf   :  { %401 = vmatpush.bf16.msra.mxu1 %v1046_v13  ;;  %v841_v43 = vor.u32 %v1019_v38, %v838_v39  ;;  %v1022_v46 = vld [vmem:[%s1534_s0 + $0x24] sm:$0xf]  ;;  %v846_v47 = vld [vmem:[%s1534_s0 + $0x30] sm:$0xf0]  ;;  %v852_v48 = vld [vmem:[%s1534_s0 + $0x28] sm:$0xf]  ;;  %v845_v52 = vor.u32 %v1024_v45, %v844_v44 }
  0x10   :  { %430 = vmatpush.bf16.msra.mxu2 %v1054_v14  ;;  %v1025_v49 = vld [vmem:[%s1534_s0 + $0x34] sm:$0xf0]  ;;  %v1023_v50 = vld [vmem:[%s1534_s0 + $0x2c] sm:$0xf]  ;;  %v854_v51 = vld [vmem:[%s1534_s0 + $0x38] sm:$0xf0]  ;;  %v849_v53 = vor.u32 %v1022_v46, %v846_v47 }
  0x11   :  { %459 = vmatpush.bf16.msra.mxu3 %v1062_v15  ;;  %v853_v54 = vor.u32 %v1025_v49, %v852_v48  ;;  %v857_v55 = vor.u32 %v1023_v50, %v854_v51  ;;  %v671_v56 = vld [vmem:[%s1535_s2 + $0x10] sm:$0xff]  ;;  %v669_v57 = vld [vmem:[%s1535_s2] sm:$0xff]  ;;  %v670_v59 = vld [vmem:[%s1535_s2 + $0x8] sm:$0xff] }
  0x12   :  { %373 = vmatpush.bf16.msra.mxu0 %v1037_v16  ;;  %689 = vperm.xlu0 %1070, %v671_v56   ;;  %v860_v60 = vld [vmem:[%s1534_s0 + $0x40] sm:$0xf]  ;;  %v1028_v61 = vld [vmem:[%s1534_s0 + $0x4c] sm:$0xf0]  ;;  %v1026_v62 = vld [vmem:[%s1534_s0 + $0x44] sm:$0xf] }
  0x13   :  { %402 = vmatpush.bf16.msra.mxu1 %v1045_v17  ;;  %679 = vperm.xlu1 %1068, %v669_v57   ;;  %v726_v63 = vld [vmem:[%s1536_s3 + $0x8] sm:$0xff]  ;;  %v673_v0 = vld [vmem:[%s1535_s2 + $0x20] sm:$0xff]  ;;  %v862_v1 = vld [vmem:[%s1534_s0 + $0x50] sm:$0xf0]  ;;  %v861_v7 = vor.u32 %v1028_v61, %v860_v60 }
  0x14   :  { %431 = vmatpush.bf16.msra.mxu2 %v1053_v18  ;;  %684 = vperm.xlu2 %1069, %v670_v59   ;;  %v868_v2 = vld [vmem:[%s1534_s0 + $0x48] sm:$0xf]  ;;  %v1029_v3 = vld [vmem:[%s1534_s0 + $0x54] sm:$0xf0]  ;;  %v1027_v4 = vld [vmem:[%s1534_s0 + $0x4c] sm:$0xf]  ;;  %v865_v8 = vor.u32 %v1026_v62, %v862_v1 }
  0x15   :  { %460 = vmatpush.bf16.msra.mxu3 %v1061_v19  ;;  %v870_v5 = vld [vmem:[%s1534_s0 + $0x58] sm:$0xf0]  ;;  %v869_v9 = vor.u32 %v1029_v3, %v868_v2  ;;  %v675_v11 = vld [vmem:[%s1535_s2 + $0x30] sm:$0xff]  ;;  %v674_v12 = vld [vmem:[%s1535_s2 + $0x28] sm:$0xff] }
  0x16   :  { %374 = vmatpush.bf16.msra.mxu0 %v1036_v20  ;;  %v672_v6 = vld [vmem:[%s1535_s2 + $0x18] sm:$0xff]  ;;  %v873_v10 = vor.u32 %v1027_v4, %v870_v5  ;;  %v876_v13 = vld [vmem:[%s1534_s0 + $0x60] sm:$0xf]  ;;  %v1032_v14 = vld [vmem:[%s1534_s0 + $0x6c] sm:$0xf0] }
  0x17   :  { %403 = vmatpush.bf16.msra.mxu1 %v1044_v21  ;;  %v1030_v15 = vld [vmem:[%s1534_s0 + $0x64] sm:$0xf]  ;;  %v878_v17 = vld [vmem:[%s1534_s0 + $0x70] sm:$0xf0]  ;;  %v884_v18 = vld [vmem:[%s1534_s0 + $0x68] sm:$0xf] }
  0x18   :  { %432 = vmatpush.bf16.msra.mxu2 %v1052_v22  ;;  %v725_v16 = vld [vmem:[%s1536_s3] sm:$0xff]  ;;  %v1033_v19 = vld [vmem:[%s1534_s0 + $0x74] sm:$0xf0]  ;;  %v1031_v20 = vld [vmem:[%s1534_s0 + $0x6c] sm:$0xf] }
  0x19   :  { %461 = vmatpush.bf16.msra.mxu3 %v1060_v23  ;;  %v886_v21 = vld [vmem:[%s1534_s0 + $0x78] sm:$0xf0]  ;;  %v877_v23 = vor.u32 %v1032_v14, %v876_v13 }
  0x1a   :  { %375 = vmatpush.bf16.msra.mxu0 %v1035_v24  ;;  %740 = vperm.xlu0 %1070, %v726_v63   ;;  %v676_v22 = vld [vmem:[%s1535_s2 + $0x38] sm:$0xff]  ;;  %v881_v24 = vor.u32 %v1030_v15, %v878_v17 }
  0x1b   :  { %404 = vmatpush.bf16.msra.mxu1 %v1043_v25  ;;  %699 = vperm.xlu1 %1068, %v673_v0   ;;  %v885_v25 = vor.u32 %v1033_v19, %v884_v18 }
  0x1c   :  { %433 = vmatpush.bf16.msra.mxu2 %v1051_v26  ;;  %694 = vperm.xlu2 %1069, %v672_v6   ;;  %v889_v26 = vor.u32 %v1031_v20, %v886_v21 }
  0x1d   :  { %462 = vmatpush.bf16.msra.mxu3 %v1059_v27 }
  0x1e   :  { %376 = vmatpush.bf16.msra.mxu0 %v1034_v28 }
  0x1f   :  { %405 = vmatpush.bf16.msra.mxu1 %v1042_v29 }
  0x20   :  { %434 = vmatpush.bf16.msra.mxu2 %v1050_v30 }
  0x21   :  { %463 = vmatpush.bf16.msra.mxu3 %v1058_v31  ;;  %377 = vmatmul.bf16.vlgmr.msra.gmra.mxu0 %v829_v40 }
  0x22   :  { %406 = vmatmul.bf16.vlgmr.msra.gmra.mxu1 %v833_v41 }
  0x23   :  { %435 = vmatmul.bf16.vlgmr.msra.gmra.mxu2 %v837_v42  ;;  %709 = vperm.xlu1 %1068, %v675_v11  }
  0x24   :  { %464 = vmatmul.bf16.vlgmr.msra.gmra.mxu3 %v841_v43  ;;  %704 = vperm.xlu2 %1069, %v674_v12  }
  0x2b   :  { %735 = vperm.xlu1 %1068, %v725_v16  }
  0x2c   :  { %714 = vperm.xlu2 %1069, %v676_v22  }
  0x31   :  { %382 = vmatmul.bf16.gmra.mxu0 %v845_v52 }
  0x32   :  { %411 = vmatmul.bf16.gmra.mxu1 %v849_v53 }
  0x33   :  { %440 = vmatmul.bf16.gmra.mxu2 %v853_v54 }
  0x34   :  { %469 = vmatmul.bf16.gmra.mxu3 %v857_v55 }
  0x41   :  { %387 = vmatmul.bf16.gmra.mxu0 %v861_v7 }
  0x42   :  { %416 = vmatmul.bf16.gmra.mxu1 %v865_v8 }
  0x43   :  { %445 = vmatmul.bf16.gmra.mxu2 %v869_v9 }
  0x44   :  { %474 = vmatmul.bf16.gmra.mxu3 %v873_v10 }
  0x51   :  { %392 = vmatmul.bf16.gmra.mxu0 %v877_v23 }
  0x52   :  { %421 = vmatmul.bf16.gmra.mxu1 %v881_v24 }
  0x53   :  { %450 = vmatmul.bf16.gmra.mxu2 %v885_v25 }
  0x54   :  { %479 = vmatmul.bf16.gmra.mxu3 %v889_v26 }
  0x9e   :  { %v378_v27 = vpop.f32.mrf.mxu0 }
  0x9f   :  { %v407_v28 = vpop.f32.mrf.mxu1 }
  0xa0   :  { %v408_v29 = vadd.f32 %v407_v28, %v378_v27  ;;  %v727_v27 = vld [vmem:[%s1536_s3 + $0x10] sm:$0xff]  ;;  %v729_v28 = vld [vmem:[%s1536_s3 + $0x20] sm:$0xff] }
  0xa6   :  { %v436_v30 = vpop.f32.mrf.mxu2  ;;  %v380_v33 = vpop.f32.mrf.mxu0 }
  0xa7   :  { %v465_v31 = vpop.f32.mrf.mxu3  ;;  %v437_v32 = vadd.f32 %v436_v30, %v408_v29  ;;  %v409_v34 = vpop.f32.mrf.mxu1  ;;  %v728_v29 = vld [vmem:[%s1536_s3 + $0x18] sm:$0xff]  ;;  %v1090_v30 = vmov 32.0  }
  0xa8   :  { %v410_v37 = vadd.f32 %v409_v34, %v380_v33  ;;  %1071 = vrcp.f32 %v1090_v30  ;;  %v1381_v33 = vpop.permute.xlu0 %689 }
  0xa9   :  { %v1338_v35 = vadd.f32 %v465_v31, %v437_v32  ;;  %v1379_v31 = vpop.permute.xlu1 %679 }
  0xab   :  { %v486_v36 = vsel %vm485_vm0, %v1338_v35, 0.0 }
  0xac   :  { %487 = vadd.xlane.f32.xlu0 %v486_v36 }
  0xae   :  { %v438_v38 = vpop.f32.mrf.mxu2  ;;  %v383_v41 = vpop.f32.mrf.mxu0 }
  0xaf   :  { %v467_v39 = vpop.f32.mrf.mxu3  ;;  %v439_v40 = vadd.f32 %v438_v38, %v410_v37  ;;  %v412_v42 = vpop.f32.mrf.mxu1 }
  0xb0   :  { %v413_v44 = vadd.f32 %v412_v42, %v383_v41  ;;  %v1072_v32 = vpop.eup %1071 }
  0xb1   :  { %v1342_v43 = vadd.f32 %v467_v39, %v439_v40  ;;  %v511_v34 = vmul.f32 32.0, %v1072_v32  ;;  %v1383_v37 = vpop.permute.xlu1 %699  ;;  %v1385_v39 = vpop.permute.xlu0 %740  ;;  %vm515_vm1 = vweird.f32 %v1072_v32 }
  0xb2   :  { %v1387_v40 = vpop.permute.xlu2 %684 }
  0xb3   :  { %v489_v45 = vsel %vm485_vm0, %v1342_v43, 0.0  ;;  %v512_v36 = vsub.f32 1.0, %v511_v34 }
  0xb4   :  { %490 = vadd.xlane.f32.xlu0 %v489_v45 }
  0xb5   :  { %v513_v38 = vmul.f32 %v1072_v32, %v512_v36 }
  0xb6   :  { %v441_v46 = vpop.f32.mrf.mxu2  ;;  %v385_v49 = vpop.f32.mrf.mxu0 }
  0xb7   :  { %v470_v47 = vpop.f32.mrf.mxu3  ;;  %v442_v48 = vadd.f32 %v441_v46, %v413_v44  ;;  %v414_v50 = vpop.f32.mrf.mxu1  ;;  %v514_v41 = vadd.f32 %v1072_v32, %v513_v38 }
  0xb8   :  { %v415_v53 = vadd.f32 %v414_v50, %v385_v49 }
  0xb9   :  { %v1346_v51 = vadd.f32 %v470_v47, %v442_v48  ;;  %v1389_v42 = vpop.permute.xlu1 %709  ;;  %v1391_v44 = vsel %vm515_vm1, %v1072_v32, %v514_v41 }
  0xba   :  { %v1397_v48 = vpop.permute.xlu2 %694 }
  0xbb   :  { %v492_v52 = vsel %vm485_vm0, %v1346_v51, 0.0 }
  0xbc   :  { %493 = vadd.xlane.f32.xlu1 %v492_v52 }
  0xbe   :  { %v443_v54 = vpop.f32.mrf.mxu2  ;;  %v388_v57 = vpop.f32.mrf.mxu0 }
  0xbf   :  { %v472_v55 = vpop.f32.mrf.mxu3  ;;  %v444_v56 = vadd.f32 %v443_v54, %v415_v53  ;;  %v417_v58 = vpop.f32.mrf.mxu1 }
  0xc0   :  { %v418_v60 = vadd.f32 %v417_v58, %v388_v57 }
  0xc1   :  { %v1350_v59 = vadd.f32 %v472_v55, %v444_v56  ;;  %v1402_v52 = vpop.permute.xlu1 %735 }
  0xc2   :  { %v1410_v56 = vpop.permute.xlu2 %704 }
  0xc3   :  { %v495_v61 = vsel %vm485_vm0, %v1350_v59, 0.0 }
  0xc4   :  { %496 = vadd.xlane.f32.xlu1 %v495_v61 }
  0xc6   :  { %v446_v62 = vpop.f32.mrf.mxu2  ;;  %v390_v1 = vpop.f32.mrf.mxu0 }
  0xc7   :  { %v475_v63 = vpop.f32.mrf.mxu3  ;;  %v447_v0 = vadd.f32 %v446_v62, %v418_v60  ;;  %v419_v2 = vpop.f32.mrf.mxu1 }
  0xc8   :  { %v420_v5 = vadd.f32 %v419_v2, %v390_v1 }
  0xc9   :  { %v1354_v3 = vadd.f32 %v475_v63, %v447_v0 }
  0xca   :  { %v1420_v63 = vpop.permute.xlu2 %714 }
  0xcb   :  { %v498_v4 = vsel %vm485_vm0, %v1354_v3, 0.0 }
  0xcc   :  { %499 = vadd.xlane.f32.xlu2 %v498_v4 }
  0xce   :  { %v448_v6 = vpop.f32.mrf.mxu2  ;;  %v393_v9 = vpop.f32.mrf.mxu0 }
  0xcf   :  { %v477_v7 = vpop.f32.mrf.mxu3  ;;  %v449_v8 = vadd.f32 %v448_v6, %v420_v5  ;;  %v422_v10 = vpop.f32.mrf.mxu1 }
  0xd0   :  { %v423_v12 = vadd.f32 %v422_v10, %v393_v9 }
  0xd1   :  { %v1358_v11 = vadd.f32 %v477_v7, %v449_v8 }
  0xd3   :  { %v501_v13 = vsel %vm485_vm0, %v1358_v11, 0.0 }
  0xd4   :  { %502 = vadd.xlane.f32.xlu2 %v501_v13 }
  0xd6   :  { %v451_v14 = vpop.f32.mrf.mxu2  ;;  %v395_v18 = vpop.f32.mrf.mxu0 }
  0xd7   :  { %v480_v15 = vpop.f32.mrf.mxu3  ;;  %v452_v16 = vadd.f32 %v451_v14, %v423_v12  ;;  %v424_v19 = vpop.f32.mrf.mxu1 }
  0xd8   :  { %v425_v21 = vadd.f32 %v424_v19, %v395_v18 }
  0xd9   :  { %v1362_v17 = vadd.f32 %v480_v15, %v452_v16 }
  0xdb   :  { %v504_v20 = vsel %vm485_vm0, %v1362_v17, 0.0 }
  0xdc   :  { %505 = vadd.xlane.f32.xlu0 %v504_v20 }
  0xde   :  { %v453_v22 = vpop.f32.mrf.mxu2 }
  0xdf   :  { %v454_v23 = vadd.f32 %v453_v22, %v425_v21  ;;  %v482_v24 = vpop.f32.mrf.mxu3 }
  0xe1   :  { %v1366_v25 = vadd.f32 %v482_v24, %v454_v23  ;;  %v730_v24 = vld [vmem:[%s1536_s3 + $0x28] sm:$0xff] }
  0xe3   :  { %v507_v26 = vsel %vm485_vm0, %v1366_v25, 0.0 }
  0xe4   :  { %508 = vadd.xlane.f32.xlu1 %v507_v26 }
  0xec   :  { %745 = vperm.xlu2 %1069, %v727_v27  }
  0xf0   :  { %755 = vperm.xlu0 %1070, %v729_v28  }
  0xfd   :  { %750 = vperm.xlu1 %1068, %v728_v29  }
 0x11f   :  { %v488_v45 = vpop.xlane.xlu0 %487 }
 0x120   :  { %v517_v46 = vmul.f32 %v1391_v44, %v488_v45 }
 0x122   :  { %v1395_v47 = vsub.f32 %v1338_v35, %v517_v46 }
 0x124   :  { %v533_v49 = vmul.f32 %v1395_v47, %v1395_v47 }
 0x126   :  { %v541_v50 = vsel %vm485_vm0, %v533_v49, 0.0 }
 0x127   :  { %542 = vadd.xlane.f32.xlu2 %v541_v50  ;;  %v491_v53 = vpop.xlane.xlu0 %490 }
 0x128   :  { %v518_v54 = vmul.f32 %v1391_v44, %v491_v53 }
 0x12a   :  { %v1406_v55 = vsub.f32 %v1342_v43, %v518_v54 }
 0x12c   :  { %v534_v35 = vmul.f32 %v1406_v55, %v1406_v55 }
 0x12e   :  { %v544_v57 = vsel %vm485_vm0, %v534_v35, 0.0 }
 0x12f   :  { %v494_v58 = vpop.xlane.xlu1 %493  ;;  %545 = vadd.xlane.f32.xlu0 %v544_v57 }
 0x130   :  { %v519_v60 = vmul.f32 %v1391_v44, %v494_v58 }
 0x132   :  { %v1415_v61 = vsub.f32 %v1346_v51, %v519_v60 }
 0x134   :  { %v535_v62 = vmul.f32 %v1415_v61, %v1415_v61 }
 0x136   :  { %v547_v43 = vsel %vm485_vm0, %v535_v62, 0.0 }
 0x137   :  { %548 = vadd.xlane.f32.xlu1 %v547_v43  ;;  %v497_v0 = vpop.xlane.xlu1 %496 }
 0x138   :  { %v520_v1 = vmul.f32 %v1391_v44, %v497_v0 }
 0x13a   :  { %v1424_v2 = vsub.f32 %v1350_v59, %v520_v1 }
 0x13c   :  { %v536_v4 = vmul.f32 %v1424_v2, %v1424_v2 }
 0x13e   :  { %v550_v51 = vsel %vm485_vm0, %v536_v4, 0.0 }
 0x13f   :  { %v500_v5 = vpop.xlane.xlu2 %499  ;;  %551 = vadd.xlane.f32.xlu2 %v550_v51 }
 0x140   :  { %v521_v6 = vmul.f32 %v1391_v44, %v500_v5 }
 0x142   :  { %v1431_v7 = vsub.f32 %v1354_v3, %v521_v6 }
 0x144   :  { %v537_v8 = vmul.f32 %v1431_v7, %v1431_v7 }
 0x146   :  { %v553_v9 = vsel %vm485_vm0, %v537_v8, 0.0 }
 0x147   :  { %v503_v10 = vpop.xlane.xlu2 %502  ;;  %554 = vadd.xlane.f32.xlu0 %v553_v9 }
 0x148   :  { %v522_v59 = vmul.f32 %v1391_v44, %v503_v10 }
 0x14a   :  { %v1438_v12 = vsub.f32 %v1358_v11, %v522_v59 }
 0x14c   :  { %v538_v13 = vmul.f32 %v1438_v12, %v1438_v12 }
 0x14e   :  { %v556_v14 = vsel %vm485_vm0, %v538_v13, 0.0 }
 0x14f   :  { %557 = vadd.xlane.f32.xlu1 %v556_v14  ;;  %v506_v3 = vpop.xlane.xlu0 %505  ;;  %v1466_v26 = vpop.permute.xlu2 %745 }
 0x150   :  { %v523_v15 = vmul.f32 %v1391_v44, %v506_v3 }
 0x152   :  { %v1445_v16 = vsub.f32 %v1362_v17, %v523_v15  ;;  %v731_v17 = vld [vmem:[%s1536_s3 + $0x30] sm:$0xff] }
 0x154   :  { %v539_v18 = vmul.f32 %v1445_v16, %v1445_v16 }
 0x156   :  { %v559_v19 = vsel %vm485_vm0, %v539_v18, 0.0 }
 0x157   :  { %v509_v20 = vpop.xlane.xlu1 %508  ;;  %560 = vadd.xlane.f32.xlu2 %v559_v19 }
 0x158   :  { %v524_v11 = vmul.f32 %v1391_v44, %v509_v20 }
 0x15a   :  { %v1452_v21 = vsub.f32 %v1366_v25, %v524_v11  ;;  %v732_v25 = vld [vmem:[%s1536_s3 + $0x38] sm:$0xff] }
 0x15c   :  { %v540_v22 = vmul.f32 %v1452_v21, %v1452_v21 }
 0x15e   :  { %v562_v23 = vsel %vm485_vm0, %v540_v22, 0.0 }
 0x15f   :  { %563 = vadd.xlane.f32.xlu0 %v562_v23 }
 0x162   :  { %v1468_v27 = vpop.permute.xlu0 %755 }
 0x168   :  { %765 = vperm.xlu1 %1068, %v731_v17  }
 0x16f   :  { %760 = vperm.xlu2 %1069, %v730_v24   ;;  %v1471_v32 = vpop.permute.xlu1 %750 }
 0x173   :  { %770 = vperm.xlu0 %1070, %v732_v25  }
 0x19a   :  { %v543_v28 = vpop.xlane.xlu2 %542 }
 0x19b   :  { %v565_v29 = vmul.f32 %v543_v28, %v1391_v44 }
 0x19d   :  { %v573_v30 = vadd.f32 1e-05, %v565_v29 }
 0x19f   :  { %1073 = vrsqrt.f32 %v573_v30  ;;  %vm587_vm3 = vweird.f32 %v573_v30 }
 0x1a2   :  { %v546_v34 = vpop.xlane.xlu0 %545 }
 0x1a3   :  { %v566_v36 = vmul.f32 %v546_v34, %v1391_v44 }
 0x1a5   :  { %v1074_v38 = vpop.eup %1073  ;;  %v574_v41 = vadd.f32 1e-05, %v566_v36 }
 0x1a6   :  { %v582_v45 = vmul.f32 %v1074_v38, %v573_v30  ;;  %vm588_vm2 = vweird.f32 %v1074_v38 }
 0x1a7   :  { %1075 = vrsqrt.f32 %v574_v41  ;;  %vm589_vm4 = vmor %vm587_vm3, %vm588_vm2  ;;  %vm597_vm6 = vweird.f32 %v574_v41 }
 0x1a8   :  { %v583_v46 = vmul.f32 %v1074_v38, %v582_v45 }
 0x1aa   :  { %v584_v49 = vmul.f32 0.5, %v583_v46  ;;  %v549_v50 = vpop.xlane.xlu1 %548 }
 0x1ab   :  { %v567_v53 = vmul.f32 %v549_v50, %v1391_v44 }
 0x1ac   :  { %v585_v54 = vsub.f32 1.5, %v584_v49 }
 0x1ad   :  { %v1076_v35 = vpop.eup %1075  ;;  %v575_v57 = vadd.f32 1e-05, %v567_v53 }
 0x1ae   :  { %v586_v58 = vmul.f32 %v1074_v38, %v585_v54  ;;  %v592_v60 = vmul.f32 %v1076_v35, %v574_v41  ;;  %vm598_vm5 = vweird.f32 %v1076_v35 }
 0x1af   :  { %1077 = vrsqrt.f32 %v575_v57  ;;  %vm599_vm8 = vmor %vm597_vm6, %vm598_vm5  ;;  %vm607_vm11 = vweird.f32 %v575_v57 }
 0x1b0   :  { %v590_v62 = vsel %vm589_vm4, %v1074_v38, %v586_v58  ;;  %v593_v43 = vmul.f32 %v1076_v35, %v592_v60 }
 0x1b1   :  { %v661_v0 = vmul.f32 %v590_v62, %v1395_v47 }
 0x1b2   :  { %v594_v1 = vmul.f32 0.5, %v593_v43  ;;  %v552_v4 = vpop.xlane.xlu2 %551 }
 0x1b3   :  { %v717_v51 = vmul.f32 %v1379_v31, %v661_v0  ;;  %v568_v5 = vmul.f32 %v552_v4, %v1391_v44 }
 0x1b4   :  { %v595_v6 = vsub.f32 1.5, %v594_v1 }
 0x1b5   :  { %v1078_v8 = vpop.eup %1077  ;;  %v773_v9 = vadd.f32 %v1402_v52, %v717_v51  ;;  %v576_v10 = vadd.f32 1e-05, %v568_v5 }
 0x1b6   :  { %v596_v59 = vmul.f32 %v1076_v35, %v595_v6  ;;  %v602_v13 = vmul.f32 %v1078_v8, %v575_v57  ;;  %vm608_vm10 = vweird.f32 %v1078_v8 }
 0x1b7   :  { %vm781_vm7 = vcmp.gt.f32.partialorder %v773_v9, 0.0  ;;  %v789_v14 = vmul.f32 0.2, %v773_v9  ;;  %1079 = vrsqrt.f32 %v576_v10  ;;  %vm609_vm13 = vmor %vm607_vm11, %vm608_vm10  ;;  %vm617_vm15 = vweird.f32 %v576_v10 }
 0x1b8   :  { %v600_v47 = vsel %vm599_vm8, %v1076_v35, %v596_v59  ;;  %v603_v3 = vmul.f32 %v1078_v8, %v602_v13 }
 0x1b9   :  { %v797_v15 = vsel %vm781_vm7, %v773_v9, %v789_v14  ;;  %v662_v31 = vmul.f32 %v600_v47, %v1406_v55 }
 0x1ba   :  { %v805_v18 = vpack.c.bf16 %v797_v15, %v797_v15  ;;  %v604_v19 = vmul.f32 0.5, %v603_v3  ;;  %v555_v20 = vpop.xlane.xlu0 %554 }
 0x1bb   :  { %v718_v11 = vmul.f32 %v1387_v40, %v662_v31  ;;  %v569_v52 = vmul.f32 %v555_v20, %v1391_v44 }
 0x1bc   :  { %814 = vst.msk [vmem:[%s1537_s4] sm:$0xf] %vm813_vm9, %v805_v18  ;;  %v605_v22 = vsub.f32 1.5, %v604_v19 }
 0x1bd   :  { %v1080_v23 = vpop.eup %1079  ;;  %v774_v17 = vadd.f32 %v1385_v39, %v718_v11  ;;  %v577_v24 = vadd.f32 1e-05, %v569_v52 }
 0x1be   :  { %v606_v25 = vmul.f32 %v1078_v8, %v605_v22  ;;  %v612_v55 = vmul.f32 %v1080_v23, %v576_v10  ;;  %vm618_vm14 = vweird.f32 %v1080_v23 }
 0x1bf   :  { %vm782_vm12 = vcmp.gt.f32.partialorder %v774_v17, 0.0  ;;  %v790_v28 = vmul.f32 0.2, %v774_v17  ;;  %1081 = vrsqrt.f32 %v577_v24  ;;  %vm619_vm1 = vmor %vm617_vm15, %vm618_vm14  ;;  %vm627_vm3 = vweird.f32 %v577_v24 }
 0x1c0   :  { %v610_v40 = vsel %vm609_vm13, %v1078_v8, %v606_v25  ;;  %v613_v29 = vmul.f32 %v1080_v23, %v612_v55 }
 0x1c1   :  { %v798_v30 = vsel %vm782_vm12, %v774_v17, %v790_v28  ;;  %v663_v34 = vmul.f32 %v610_v40, %v1415_v61 }
 0x1c2   :  { %v806_v36 = vpack.c.bf16 %v798_v30, %v798_v30  ;;  %v614_v38 = vmul.f32 0.5, %v613_v29  ;;  %v558_v41 = vpop.xlane.xlu1 %557 }
 0x1c3   :  { %v719_v45 = vmul.f32 %v1381_v33, %v663_v34  ;;  %v570_v39 = vmul.f32 %v558_v41, %v1391_v44 }
 0x1c4   :  { %815 = vst.msk [vmem:[%s1537_s4 + $0x4] sm:$0xf] %vm813_vm9, %v806_v36  ;;  %v615_v46 = vsub.f32 1.5, %v614_v38 }
 0x1c5   :  { %v1082_v49 = vpop.eup %1081  ;;  %v775_v50 = vadd.f32 %v1466_v26, %v719_v45  ;;  %v578_v53 = vadd.f32 1e-05, %v570_v39 }
 0x1c6   :  { %v616_v54 = vmul.f32 %v1080_v23, %v615_v46  ;;  %v622_v61 = vmul.f32 %v1082_v49, %v577_v24  ;;  %vm628_vm2 = vweird.f32 %v1082_v49 }
 0x1c7   :  { %vm783_vm0 = vcmp.gt.f32.partialorder %v775_v50, 0.0  ;;  %v791_v35 = vmul.f32 0.2, %v775_v50  ;;  %1083 = vrsqrt.f32 %v578_v53  ;;  %vm629_vm5 = vmor %vm627_vm3, %vm628_vm2  ;;  %vm637_vm7 = vweird.f32 %v578_v53 }
 0x1c8   :  { %v620_v33 = vsel %vm619_vm1, %v1080_v23, %v616_v54  ;;  %v623_v57 = vmul.f32 %v1082_v49, %v622_v61 }
 0x1c9   :  { %v799_v58 = vsel %vm783_vm0, %v775_v50, %v791_v35  ;;  %v664_v60 = vmul.f32 %v620_v33, %v1424_v2 }
 0x1ca   :  { %v807_v62 = vpack.c.bf16 %v799_v58, %v799_v58  ;;  %v624_v43 = vmul.f32 0.5, %v623_v57  ;;  %v561_v0 = vpop.xlane.xlu2 %560 }
 0x1cb   :  { %v720_v1 = vmul.f32 %v1397_v48, %v664_v60  ;;  %v571_v26 = vmul.f32 %v561_v0, %v1391_v44 }
 0x1cc   :  { %816 = vst.msk [vmem:[%s1537_s4 + $0x8] sm:$0xf] %vm813_vm9, %v807_v62  ;;  %v625_v4 = vsub.f32 1.5, %v624_v43 }
 0x1cd   :  { %v1084_v51 = vpop.eup %1083  ;;  %v776_v5 = vadd.f32 %v1471_v32, %v720_v1  ;;  %v579_v6 = vadd.f32 1e-05, %v571_v26 }
 0x1ce   :  { %v626_v8 = vmul.f32 %v1082_v49, %v625_v4  ;;  %v632_v2 = vmul.f32 %v1084_v51, %v578_v53  ;;  %vm638_vm6 = vweird.f32 %v1084_v51 }
 0x1cf   :  { %vm784_vm4 = vcmp.gt.f32.partialorder %v776_v5, 0.0  ;;  %v792_v9 = vmul.f32 0.2, %v776_v5  ;;  %1085 = vrsqrt.f32 %v579_v6  ;;  %vm639_vm10 = vmor %vm637_vm7, %vm638_vm6  ;;  %vm647_vm12 = vweird.f32 %v579_v6 }
 0x1d0   :  { %v630_v48 = vsel %vm629_vm5, %v1082_v49, %v626_v8  ;;  %v633_v10 = vmul.f32 %v1084_v51, %v632_v2 }
 0x1d1   :  { %v800_v59 = vsel %vm784_vm4, %v776_v5, %v792_v9  ;;  %v665_v13 = vmul.f32 %v630_v48, %v1431_v7 }
 0x1d2   :  { %v808_v14 = vpack.c.bf16 %v800_v59, %v800_v59  ;;  %v634_v47 = vmul.f32 0.5, %v633_v10  ;;  %v564_v3 = vpop.xlane.xlu0 %563  ;;  %v761_v55 = vpop.permute.xlu2 %760 }
 0x1d3   :  { %v721_v15 = vmul.f32 %v1383_v37, %v665_v13  ;;  %v572_v32 = vmul.f32 %v564_v3, %v1391_v44 }
 0x1d4   :  { %817 = vst.msk [vmem:[%s1537_s4 + $0xc] sm:$0xf] %vm813_vm9, %v808_v14  ;;  %v635_v31 = vsub.f32 1.5, %v634_v47 }
 0x1d5   :  { %v1086_v18 = vpop.eup %1085  ;;  %v777_v19 = vadd.f32 %v1468_v27, %v721_v15  ;;  %v580_v20 = vadd.f32 1e-05, %v572_v32 }
 0x1d6   :  { %v642_v7 = vmul.f32 %v1086_v18, %v579_v6  ;;  %v636_v11 = vmul.f32 %v1084_v51, %v635_v31  ;;  %vm648_vm11 = vweird.f32 %v1086_v18 }
 0x1d7   :  { %vm785_vm8 = vcmp.gt.f32.partialorder %v777_v19, 0.0  ;;  %v793_v52 = vmul.f32 0.2, %v777_v19  ;;  %1087 = vrsqrt.f32 %v580_v20  ;;  %vm649_vm13 = vmor %vm647_vm12, %vm648_vm11  ;;  %vm657_vm0 = vweird.f32 %v580_v20 }
 0x1d8   :  { %v643_v37 = vmul.f32 %v1086_v18, %v642_v7  ;;  %v640_v44 = vsel %vm639_vm10, %v1084_v51, %v636_v11 }
 0x1d9   :  { %v801_v22 = vsel %vm785_vm8, %v777_v19, %v793_v52  ;;  %v666_v23 = vmul.f32 %v640_v44, %v1438_v12 }
 0x1da   :  { %v809_v17 = vpack.c.bf16 %v801_v22, %v801_v22  ;;  %v644_v24 = vmul.f32 0.5, %v643_v37  ;;  %v766_v49 = vpop.permute.xlu1 %765 }
 0x1db   :  { %v722_v25 = vmul.f32 %v1410_v56, %v666_v23 }
 0x1dc   :  { %818 = vst.msk [vmem:[%s1537_s4 + $0x10] sm:$0xf] %vm813_vm9, %v809_v17  ;;  %v645_v27 = vsub.f32 1.5, %v644_v24 }
 0x1dd   :  { %v1088_v28 = vpop.eup %1087  ;;  %v778_v40 = vadd.f32 %v761_v55, %v722_v25 }
 0x1de   :  { %v652_v29 = vmul.f32 %v1088_v28, %v580_v20  ;;  %v646_v30 = vmul.f32 %v1086_v18, %v645_v27  ;;  %vm658_vm15 = vweird.f32 %v1088_v28 }
 0x1df   :  { %vm786_vm14 = vcmp.gt.f32.partialorder %v778_v40, 0.0  ;;  %v794_v12 = vmul.f32 0.2, %v778_v40  ;;  %vm659_vm1 = vmor %vm657_vm0, %vm658_vm15 }
 0x1e0   :  { %v653_v34 = vmul.f32 %v1088_v28, %v652_v29  ;;  %v650_v36 = vsel %vm649_vm13, %v1086_v18, %v646_v30 }
 0x1e1   :  { %v802_v38 = vsel %vm786_vm14, %v778_v40, %v794_v12  ;;  %v667_v56 = vmul.f32 %v650_v36, %v1445_v16 }
 0x1e2   :  { %v810_v41 = vpack.c.bf16 %v802_v38, %v802_v38  ;;  %v654_v45 = vmul.f32 0.5, %v653_v34 }
 0x1e3   :  { %v723_v39 = vmul.f32 %v1389_v42, %v667_v56 }
 0x1e4   :  { %819 = vst.msk [vmem:[%s1537_s4 + $0x14] sm:$0xf] %vm813_vm9, %v810_v41  ;;  %v655_v46 = vsub.f32 1.5, %v654_v45 }
 0x1e5   :  { %v779_v50 = vadd.f32 %v766_v49, %v723_v39  ;;  %v771_v57 = vpop.permute.xlu0 %770 }
 0x1e6   :  { %v656_v53 = vmul.f32 %v1088_v28, %v655_v46 }
 0x1e7   :  { %vm787_vm2 = vcmp.gt.f32.partialorder %v779_v50, 0.0  ;;  %v795_v54 = vmul.f32 0.2, %v779_v50 }
 0x1e8   :  { %v660_v61 = vsel %vm659_vm1, %v1088_v28, %v656_v53 }
 0x1e9   :  { %v803_v16 = vsel %vm787_vm2, %v779_v50, %v795_v54  ;;  %v668_v35 = vmul.f32 %v660_v61, %v1452_v21 }
 0x1ea   :  { %v811_v33 = vpack.c.bf16 %v803_v16, %v803_v16 }
 0x1eb   :  { %v724_v42 = vmul.f32 %v1420_v63, %v668_v35 }
 0x1ec   :  { %820 = vst.msk [vmem:[%s1537_s4 + $0x18] sm:$0xf] %vm813_vm9, %v811_v33 }
 0x1ed   :  { %v780_v58 = vadd.f32 %v771_v57, %v724_v42 }
 0x1ef   :  { %vm788_vm3 = vcmp.gt.f32.partialorder %v780_v58, 0.0  ;;  %v796_v60 = vmul.f32 0.2, %v780_v58 }
 0x1f1   :  { %v804_v62 = vsel %vm788_vm3, %v780_v58, %v796_v60 }
 0x1f2   :  { %v812_v43 = vpack.c.bf16 %v804_v62, %v804_v62 }
 0x1f4   :  { %821 = vst.msk [vmem:[%s1537_s4 + $0x1c] sm:$0xf] %vm813_vm9, %v812_v43 }

// kernel: dcgan_discriminator64_forward.9
= control target key start
LH: loop header
LB: loop body
LE: loop exit
PB: predicated region body
PF: predicated region fallthrough
CT: control target
= control target key end

     0   :  { %vm678_vm3 = vcmask 15360   ;;  %s1231_s1 = inlined_call_operand.vmem [shape: bf16[1024,2], index: 1, kind: input, shape index: {}]   ;;  %s1232_s0 = inlined_call_operand.vmem [shape: bf16[8,1024], index: 0, kind: input, shape index: {}]   ;;  %s1233_s2 = inlined_call_operand.vmem [shape: f32[8,2], index: 2, kind: output, shape index: {}]  }
   0x1   :  { %v948_v0 = vld [vmem:[%s1231_s1 + $0x38] sm:$0xff]  ;;  %v947_v4 = vld [vmem:[%s1231_s1 + $0x30] sm:$0xff]  ;;  %v946_v8 = vld [vmem:[%s1231_s1 + $0x28] sm:$0xff] }
   0x2   :  { %v956_v1 = vld [vmem:[%s1231_s1 + $0x78] sm:$0xff]  ;;  %555 = vmatpush.bf16.msra.mxu0 %v948_v0  ;;  %v955_v5 = vld [vmem:[%s1231_s1 + $0x70] sm:$0xff]  ;;  %v954_v9 = vld [vmem:[%s1231_s1 + $0x68] sm:$0xff] }
   0x3   :  { %v964_v2 = vld [vmem:[%s1231_s1 + $0xb8] sm:$0xff]  ;;  %568 = vmatpush.bf16.msra.mxu1 %v956_v1  ;;  %v963_v6 = vld [vmem:[%s1231_s1 + $0xb0] sm:$0xff]  ;;  %v962_v10 = vld [vmem:[%s1231_s1 + $0xa8] sm:$0xff] }
   0x4   :  { %v972_v3 = vld [vmem:[%s1231_s1 + $0xf8] sm:$0xff]  ;;  %581 = vmatpush.bf16.msra.mxu2 %v964_v2  ;;  %v971_v7 = vld [vmem:[%s1231_s1 + $0xf0] sm:$0xff]  ;;  %v970_v11 = vld [vmem:[%s1231_s1 + $0xe8] sm:$0xff] }
   0x5   :  { %594 = vmatpush.bf16.msra.mxu3 %v972_v3  ;;  %v945_v12 = vld [vmem:[%s1231_s1 + $0x20] sm:$0xff]  ;;  %v944_v16 = vld [vmem:[%s1231_s1 + $0x18] sm:$0xff]  ;;  %v943_v20 = vld [vmem:[%s1231_s1 + $0x10] sm:$0xff] }
   0x6   :  { %556 = vmatpush.bf16.msra.mxu0 %v947_v4  ;;  %v953_v13 = vld [vmem:[%s1231_s1 + $0x60] sm:$0xff]  ;;  %v952_v17 = vld [vmem:[%s1231_s1 + $0x58] sm:$0xff]  ;;  %v951_v21 = vld [vmem:[%s1231_s1 + $0x50] sm:$0xff] }
   0x7   :  { %569 = vmatpush.bf16.msra.mxu1 %v955_v5  ;;  %v961_v14 = vld [vmem:[%s1231_s1 + $0xa0] sm:$0xff]  ;;  %v960_v18 = vld [vmem:[%s1231_s1 + $0x98] sm:$0xff]  ;;  %v959_v22 = vld [vmem:[%s1231_s1 + $0x90] sm:$0xff] }
   0x8   :  { %582 = vmatpush.bf16.msra.mxu2 %v963_v6  ;;  %v969_v15 = vld [vmem:[%s1231_s1 + $0xe0] sm:$0xff]  ;;  %v968_v19 = vld [vmem:[%s1231_s1 + $0xd8] sm:$0xff]  ;;  %v967_v23 = vld [vmem:[%s1231_s1 + $0xd0] sm:$0xff] }
   0x9   :  { %595 = vmatpush.bf16.msra.mxu3 %v971_v7  ;;  %v942_v24 = vld [vmem:[%s1231_s1 + $0x8] sm:$0xff]  ;;  %v11_v29 = vld [vmem:[%s1232_s0] sm:$0xff]  ;;  %v980_v38 = vld [vmem:[%s1231_s1 + $0x138] sm:$0xff] }
   0xa   :  { %557 = vmatpush.bf16.msra.mxu0 %v946_v8  ;;  %v950_v25 = vld [vmem:[%s1231_s1 + $0x48] sm:$0xff]  ;;  %v941_v30 = vld [vmem:[%s1231_s1] sm:$0xff]  ;;  %v147_v33 = vunpack.c.l.b16 %v11_v29  ;;  %v148_v37 = vunpack.c.h.b16 %v11_v29  ;;  %v988_v39 = vld [vmem:[%s1231_s1 + $0x178] sm:$0xff] }
   0xb   :  { %570 = vmatpush.bf16.msra.mxu1 %v954_v9  ;;  %v958_v26 = vld [vmem:[%s1231_s1 + $0x88] sm:$0xff]  ;;  %v949_v31 = vld [vmem:[%s1231_s1 + $0x40] sm:$0xff]  ;;  %v996_v40 = vld [vmem:[%s1231_s1 + $0x1b8] sm:$0xff] }
   0xc   :  { %583 = vmatpush.bf16.msra.mxu2 %v962_v10  ;;  %v966_v27 = vld [vmem:[%s1231_s1 + $0xc8] sm:$0xff]  ;;  %v957_v34 = vld [vmem:[%s1231_s1 + $0x80] sm:$0xff]  ;;  %v1004_v41 = vld [vmem:[%s1231_s1 + $0x1f8] sm:$0xff]  ;;  %v155_v43 = vpack.c.b16 %v147_v33, %v147_v33  ;;  %v156_v45 = vpack.c.b16 %v148_v37, %v148_v37 }
   0xd   :  { %596 = vmatpush.bf16.msra.mxu3 %v970_v11  ;;  %v12_v28 = vld [vmem:[%s1232_s0 + $0x8] sm:$0xff]  ;;  %v965_v35 = vld [vmem:[%s1231_s1 + $0xc0] sm:$0xff]  ;;  %v979_v46 = vld [vmem:[%s1231_s1 + $0x130] sm:$0xff] }
   0xe   :  { %558 = vmatpush.bf16.msra.mxu0 %v945_v12  ;;  %v149_v32 = vunpack.c.l.b16 %v12_v28  ;;  %v150_v36 = vunpack.c.h.b16 %v12_v28  ;;  %v987_v47 = vld [vmem:[%s1231_s1 + $0x170] sm:$0xff]  ;;  %v978_v50 = vld [vmem:[%s1231_s1 + $0x128] sm:$0xff]  ;;  %v977_v54 = vld [vmem:[%s1231_s1 + $0x120] sm:$0xff] }
   0xf   :  { %571 = vmatpush.bf16.msra.mxu1 %v953_v13  ;;  %v995_v48 = vld [vmem:[%s1231_s1 + $0x1b0] sm:$0xff]  ;;  %v986_v51 = vld [vmem:[%s1231_s1 + $0x168] sm:$0xff]  ;;  %v985_v55 = vld [vmem:[%s1231_s1 + $0x160] sm:$0xff] }
  0x10   :  { %584 = vmatpush.bf16.msra.mxu2 %v961_v14  ;;  %v157_v42 = vpack.c.b16 %v149_v32, %v149_v32  ;;  %v158_v44 = vpack.c.b16 %v150_v36, %v150_v36  ;;  %v1003_v49 = vld [vmem:[%s1231_s1 + $0x1f0] sm:$0xff]  ;;  %v994_v52 = vld [vmem:[%s1231_s1 + $0x1a8] sm:$0xff]  ;;  %v993_v56 = vld [vmem:[%s1231_s1 + $0x1a0] sm:$0xff] }
  0x11   :  { %597 = vmatpush.bf16.msra.mxu3 %v969_v15  ;;  %v1002_v53 = vld [vmem:[%s1231_s1 + $0x1e8] sm:$0xff]  ;;  %v1001_v57 = vld [vmem:[%s1231_s1 + $0x1e0] sm:$0xff]  ;;  %v976_v58 = vld [vmem:[%s1231_s1 + $0x118] sm:$0xff] }
  0x12   :  { %559 = vmatpush.bf16.msra.mxu0 %v944_v16  ;;  %v984_v59 = vld [vmem:[%s1231_s1 + $0x158] sm:$0xff]  ;;  %v975_v62 = vld [vmem:[%s1231_s1 + $0x110] sm:$0xff]  ;;  %v974_v2 = vld [vmem:[%s1231_s1 + $0x108] sm:$0xff] }
  0x13   :  { %572 = vmatpush.bf16.msra.mxu1 %v952_v17  ;;  %v992_v60 = vld [vmem:[%s1231_s1 + $0x198] sm:$0xff]  ;;  %v983_v63 = vld [vmem:[%s1231_s1 + $0x150] sm:$0xff]  ;;  %v982_v3 = vld [vmem:[%s1231_s1 + $0x148] sm:$0xff] }
  0x14   :  { %585 = vmatpush.bf16.msra.mxu2 %v960_v18  ;;  %v1000_v61 = vld [vmem:[%s1231_s1 + $0x1d8] sm:$0xff]  ;;  %v991_v0 = vld [vmem:[%s1231_s1 + $0x190] sm:$0xff]  ;;  %v990_v5 = vld [vmem:[%s1231_s1 + $0x188] sm:$0xff] }
  0x15   :  { %598 = vmatpush.bf16.msra.mxu3 %v968_v19  ;;  %v999_v1 = vld [vmem:[%s1231_s1 + $0x1d0] sm:$0xff]  ;;  %v998_v6 = vld [vmem:[%s1231_s1 + $0x1c8] sm:$0xff]  ;;  %v14_v7 = vld [vmem:[%s1232_s0 + $0x18] sm:$0xff] }
  0x16   :  { %560 = vmatpush.bf16.msra.mxu0 %v943_v20  ;;  %v13_v4 = vld [vmem:[%s1232_s0 + $0x10] sm:$0xff]  ;;  %v973_v10 = vld [vmem:[%s1231_s1 + $0x100] sm:$0xff]  ;;  %v153_v12 = vunpack.c.l.b16 %v14_v7  ;;  %v154_v13 = vunpack.c.h.b16 %v14_v7 }
  0x17   :  { %573 = vmatpush.bf16.msra.mxu1 %v951_v21  ;;  %v151_v8 = vunpack.c.l.b16 %v13_v4  ;;  %v152_v9 = vunpack.c.h.b16 %v13_v4  ;;  %v981_v11 = vld [vmem:[%s1231_s1 + $0x140] sm:$0xff] }
  0x18   :  { %586 = vmatpush.bf16.msra.mxu2 %v959_v22  ;;  %v989_v14 = vld [vmem:[%s1231_s1 + $0x180] sm:$0xff]  ;;  %v161_v18 = vpack.c.b16 %v153_v12, %v153_v12  ;;  %v162_v19 = vpack.c.b16 %v154_v13, %v154_v13 }
  0x19   :  { %599 = vmatpush.bf16.msra.mxu3 %v967_v23  ;;  %v997_v15 = vld [vmem:[%s1231_s1 + $0x1c0] sm:$0xff]  ;;  %v159_v16 = vpack.c.b16 %v151_v8, %v151_v8  ;;  %v160_v17 = vpack.c.b16 %v152_v9, %v152_v9 }
  0x1a   :  { %561 = vmatpush.bf16.msra.mxu0 %v942_v24 }
  0x1b   :  { %574 = vmatpush.bf16.msra.mxu1 %v950_v25 }
  0x1c   :  { %587 = vmatpush.bf16.msra.mxu2 %v958_v26 }
  0x1d   :  { %600 = vmatpush.bf16.msra.mxu3 %v966_v27 }
  0x1e   :  { %562 = vmatpush.bf16.msra.mxu0 %v941_v30 }
  0x1f   :  { %575 = vmatpush.bf16.msra.mxu1 %v949_v31 }
  0x20   :  { %588 = vmatpush.bf16.msra.mxu2 %v957_v34 }
  0x21   :  { %601 = vmatpush.bf16.msra.mxu3 %v965_v35  ;;  %563 = vmatmul.bf16.vlgmr.msra.gmra.mxu0 %v155_v43 }
  0x22   :  { %607 = vmatpush.bf16.msrb.mxu0 %v980_v38  ;;  %576 = vmatmul.bf16.vlgmr.msra.gmra.mxu1 %v156_v45 }
  0x23   :  { %620 = vmatpush.bf16.msrb.mxu1 %v988_v39  ;;  %589 = vmatmul.bf16.vlgmr.msra.gmra.mxu2 %v157_v42 }
  0x24   :  { %633 = vmatpush.bf16.msrb.mxu2 %v996_v40  ;;  %602 = vmatmul.bf16.vlgmr.msra.gmra.mxu3 %v158_v44 }
  0x25   :  { %646 = vmatpush.bf16.msrb.mxu3 %v1004_v41 }
  0x26   :  { %608 = vmatpush.bf16.msrb.mxu0 %v979_v46 }
  0x27   :  { %621 = vmatpush.bf16.msrb.mxu1 %v987_v47 }
  0x28   :  { %634 = vmatpush.bf16.msrb.mxu2 %v995_v48 }
  0x29   :  { %647 = vmatpush.bf16.msrb.mxu3 %v1003_v49 }
  0x2a   :  { %609 = vmatpush.bf16.msrb.mxu0 %v978_v50 }
  0x2b   :  { %622 = vmatpush.bf16.msrb.mxu1 %v986_v51 }
  0x2c   :  { %635 = vmatpush.bf16.msrb.mxu2 %v994_v52 }
  0x2d   :  { %648 = vmatpush.bf16.msrb.mxu3 %v1002_v53 }
  0x2e   :  { %610 = vmatpush.bf16.msrb.mxu0 %v977_v54 }
  0x2f   :  { %623 = vmatpush.bf16.msrb.mxu1 %v985_v55 }
  0x30   :  { %636 = vmatpush.bf16.msrb.mxu2 %v993_v56 }
  0x31   :  { %649 = vmatpush.bf16.msrb.mxu3 %v1001_v57 }
  0x32   :  { %611 = vmatpush.bf16.msrb.mxu0 %v976_v58 }
  0x33   :  { %624 = vmatpush.bf16.msrb.mxu1 %v984_v59 }
  0x34   :  { %637 = vmatpush.bf16.msrb.mxu2 %v992_v60 }
  0x35   :  { %650 = vmatpush.bf16.msrb.mxu3 %v1000_v61 }
  0x36   :  { %612 = vmatpush.bf16.msrb.mxu0 %v975_v62 }
  0x37   :  { %625 = vmatpush.bf16.msrb.mxu1 %v983_v63 }
  0x38   :  { %638 = vmatpush.bf16.msrb.mxu2 %v991_v0 }
  0x39   :  { %651 = vmatpush.bf16.msrb.mxu3 %v999_v1 }
  0x3a   :  { %613 = vmatpush.bf16.msrb.mxu0 %v974_v2 }
  0x3b   :  { %626 = vmatpush.bf16.msrb.mxu1 %v982_v3 }
  0x3c   :  { %639 = vmatpush.bf16.msrb.mxu2 %v990_v5 }
  0x3d   :  { %652 = vmatpush.bf16.msrb.mxu3 %v998_v6 }
  0x3e   :  { %614 = vmatpush.bf16.msrb.mxu0 %v973_v10 }
  0x3f   :  { %627 = vmatpush.bf16.msrb.mxu1 %v981_v11 }
  0x40   :  { %640 = vmatpush.bf16.msrb.mxu2 %v989_v14 }
  0x41   :  { %653 = vmatpush.bf16.msrb.mxu3 %v997_v15  ;;  %615 = vmatmul.bf16.vlgmr.msrb.gmra.mxu0 %v159_v16 }
  0x42   :  { %628 = vmatmul.bf16.vlgmr.msrb.gmra.mxu1 %v160_v17 }
  0x43   :  { %641 = vmatmul.bf16.vlgmr.msrb.gmra.mxu2 %v161_v18 }
  0x44   :  { %654 = vmatmul.bf16.vlgmr.msrb.gmra.mxu3 %v162_v19 }
  0x9e   :  { %v564_v20 = vpop.f32.mrf.mxu0 }
  0x9f   :  { %v577_v21 = vpop.f32.mrf.mxu1 }
  0xa0   :  { %v578_v28 = vadd.f32 %v577_v21, %v564_v20 }
  0xa6   :  { %v590_v22 = vpop.f32.mrf.mxu2  ;;  %v566_v24 = vpop.f32.mrf.mxu0 }
  0xa7   :  { %v603_v23 = vpop.f32.mrf.mxu3  ;;  %v579_v25 = vpop.f32.mrf.mxu1  ;;  %v591_v29 = vadd.f32 %v590_v22, %v578_v28 }
  0xa9   :  { %v604_v30 = vadd.f32 %v603_v23, %v591_v29 }
  0xae   :  { %v592_v26 = vpop.f32.mrf.mxu2 }
  0xaf   :  { %v605_v27 = vpop.f32.mrf.mxu3 }
  0xbe   :  { %v616_v31 = vpop.f32.mrf.mxu0 }
  0xbf   :  { %v629_v32 = vpop.f32.mrf.mxu1  ;;  %v617_v33 = vadd.f32 %v616_v31, %v604_v30 }
  0xc1   :  { %v630_v34 = vadd.f32 %v629_v32, %v617_v33 }
  0xc6   :  { %v642_v35 = vpop.f32.mrf.mxu2  ;;  %v618_v38 = vpop.f32.mrf.mxu0 }
  0xc7   :  { %v655_v36 = vpop.f32.mrf.mxu3  ;;  %v643_v37 = vadd.f32 %v642_v35, %v630_v34  ;;  %v631_v39 = vpop.f32.mrf.mxu1 }
  0xc9   :  { %v656_v40 = vadd.f32 %v655_v36, %v643_v37 }
  0xcb   :  { %v940_v41 = vmul.f32 -1.442695, %v656_v40 }
  0xcd   :  { %1005 = vpow2.f32 %v940_v41 }
  0xce   :  { %v644_v42 = vpop.f32.mrf.mxu2 }
  0xcf   :  { %v657_v43 = vpop.f32.mrf.mxu3 }
  0xd3   :  { %v1006_v44 = vpop.eup %1005 }
  0xd4   :  { %v662_v45 = vadd.f32 1.0, %v1006_v44 }
  0xd6   :  { %1007 = vrcp.f32 %v662_v45  ;;  %v674_v49 = vand.u32 2147483648, %v662_v45  ;;  %v672_v51 = vand.u32 2147483647, %v662_v45  ;;  %vm668_vm1 = vweird.f32 %v662_v45 }
  0xd8   :  { %v675_v53 = vor.u32 1.1754944e-38, %v674_v49  ;;  %vm673_vm4 = vcmp.eq.f32.partialorder %v672_v51, 8.507059e+37 }
  0xdc   :  { %v1008_v46 = vpop.eup %1007 }
  0xdd   :  { %v664_v47 = vmul.f32 %v1008_v46, %v662_v45  ;;  %vm669_vm0 = vweird.f32 %v1008_v46 }
  0xde   :  { %vm670_vm2 = vmor %vm668_vm1, %vm669_vm0 }
  0xdf   :  { %v665_v48 = vsub.f32 1.0, %v664_v47 }
  0xe1   :  { %v666_v50 = vmul.f32 %v1008_v46, %v665_v48 }
  0xe3   :  { %v667_v52 = vadd.f32 %v1008_v46, %v666_v50 }
  0xe5   :  { %v671_v54 = vsel %vm670_vm2, %v1008_v46, %v667_v52 }
  0xe6   :  { %v676_v55 = vsel %vm673_vm4, %v675_v53, %v671_v54 }
  0xe7   :  { %679 = vst.msk [vmem:[%s1233_s2] sm:$0xff] %vm678_vm3, %v676_v55 }

</bundles_post_ra>
